<compile_context>
chip_gen: v6e
topology: v6e:2x2x1
jax: 0.10.0
libtpu: 0.0.40
codegen_flags: <defaults>
</compile_context>

<pallas_src>
import functools
import math

import jax
import jax.numpy as jnp
from jax.experimental import pallas as pl
from jax.experimental.pallas import tpu as pltpu

_BN_EPS = 1e-5


def _rup(x, m):
    return (x + m - 1) // m * m


# ----------------------------------------------------------------------------
# Tile-size selection
# ----------------------------------------------------------------------------

def _tm_for(M):
    """Row (M) padding + tile: up to 1024-row tiles, full-array when small."""
    m16 = _rup(M, 16)
    if m16 <= 1024:
        return m16, m16
    m_pad = _rup(m16, 512)
    tm = 1024 if m_pad % 1024 == 0 else 512
    return m_pad, tm


def _tk_for(K_pad):
    """Largest multiple of 128 <= 1024 that divides K_pad (K_pad % 128 == 0)."""
    start = min(1024, K_pad)
    for t in range(start, 127, -128):
        if K_pad % t == 0:
            return t
    return 128


def _tn_for(N_pad, m_blocks):
    """Widest lane tile that divides N_pad; keep >=2 parallel grid steps when
    the M axis only has one block (v7x has 2 TensorCores)."""
    min_blocks = 2 if m_blocks == 1 else 1
    for t in (512, 256, 128):
        if N_pad % t == 0 and N_pad // t >= min_blocks:
            return t
    return 128


def _vmem_limit(footprint_bytes):
    # Explicit scoped-VMEM limit: above v5e's 16 MiB default, capped at 48 MiB
    # so it never exceeds v7x's 64 MiB physical VMEM per TensorCore.
    return int(min(max(2 * footprint_bytes, 32 * 2**20), 48 * 2**20))


# ----------------------------------------------------------------------------
# Pallas kernels
# ----------------------------------------------------------------------------

def _mm_kernel(a_ref, b_ref, s_ref, c_ref, o_ref, acc_ref, *, relu):
    """K-tiled bf16 MXU matmul, f32 acc, fused scale/bias(/ReLU) epilogue."""
    k = pl.program_id(2)

    @pl.when(k == 0)
    def _():
        acc_ref[...] = jnp.zeros_like(acc_ref)

    acc_ref[...] += jnp.dot(a_ref[...], b_ref[...],
                            preferred_element_type=jnp.float32)

    @pl.when(k == pl.num_programs(2) - 1)
    def _():
        out = acc_ref[...] * s_ref[...] + c_ref[...]
        if relu:
            out = jnp.maximum(out, 0.0)
        o_ref[...] = out.astype(o_ref.dtype)


def _mm_res_kernel(a_ref, b_ref, s_ref, c_ref, r_ref, o_ref, acc_ref):
    """K-tiled matmul with fused residual add + ReLU epilogue."""
    k = pl.program_id(2)

    @pl.when(k == 0)
    def _():
        acc_ref[...] = jnp.zeros_like(acc_ref)

    acc_ref[...] += jnp.dot(a_ref[...], b_ref[...],
                            preferred_element_type=jnp.float32)

    @pl.when(k == pl.num_programs(2) - 1)
    def _():
        out = (acc_ref[...] * s_ref[...] + c_ref[...]
               + r_ref[...].astype(jnp.float32))
        o_ref[...] = jnp.maximum(out, 0.0).astype(o_ref.dtype)


def _mm_kernel_1k(a_ref, b_ref, s_ref, c_ref, o_ref, *, relu):
    """Single-K-step matmul: no scratch accumulator, direct epilogue write."""
    acc = jnp.dot(a_ref[...], b_ref[...], preferred_element_type=jnp.float32)
    out = acc * s_ref[...] + c_ref[...]
    if relu:
        out = jnp.maximum(out, 0.0)
    o_ref[...] = out.astype(o_ref.dtype)


def _mm_res_kernel_1k(a_ref, b_ref, s_ref, c_ref, r_ref, o_ref):
    acc = jnp.dot(a_ref[...], b_ref[...], preferred_element_type=jnp.float32)
    out = acc * s_ref[...] + c_ref[...] + r_ref[...].astype(jnp.float32)
    o_ref[...] = jnp.maximum(out, 0.0).astype(o_ref.dtype)


def _mm_hm_kernel(a_ref, b_ref, s_ref, c_ref, hb_ref, hc_ref, o_ref):
    """Last deconv phase conv fused with the 1x1 heatmap conv.

    feat = relu(dot(A, B) * scale + bias)   (deconv + folded BN + ReLU)
    out  = dot(feat, W_hm) + b_hm           (heatmap head, f32 output)
    The 256-channel feature map never leaves VMEM.
    """
    acc = jnp.dot(a_ref[...], b_ref[...], preferred_element_type=jnp.float32)
    feat = jnp.maximum(acc * s_ref[...] + c_ref[...], 0.0).astype(jnp.bfloat16)
    hm = jnp.dot(feat, hb_ref[...], preferred_element_type=jnp.float32)
    o_ref[...] = (hm + hc_ref[...]).astype(o_ref.dtype)


def _maxpool_kernel(p_ref, o_ref):
    o_ref[...] = jnp.maximum(jnp.maximum(p_ref[0], p_ref[1]), p_ref[2])


# ----------------------------------------------------------------------------
# pallas_call builders (cached on static shape/tile parameters)
# ----------------------------------------------------------------------------

@functools.lru_cache(maxsize=None)
def _get_matmul_fn(M_pad, K_pad, N_pad, TM, TK, TN, relu, has_res, out_dtype):
    out_dt = jnp.dtype(out_dtype)
    k_steps = K_pad // TK

    fp = 2 * (TM * TK * 2 + TK * TN * 2 + TM * TN * out_dt.itemsize)
    if has_res:
        fp += 2 * TM * TN * 2
    fp += TM * TN * 4 + 4 * TN * 4

    if k_steps == 1:
        grid = (M_pad // TM, N_pad // TN)
        a_map = lambda i, j: (i, 0)
        b_map = lambda i, j: (0, j)
        v_map = lambda i, j: (0, j)
        o_map = lambda i, j: (i, j)
        scratch = []
        sem = ("parallel", "parallel")
        kernel = (_mm_res_kernel_1k if has_res
                  else functools.partial(_mm_kernel_1k, relu=relu))
    else:
        grid = (M_pad // TM, N_pad // TN, k_steps)
        a_map = lambda i, j, k: (i, k)
        b_map = lambda i, j, k: (k, j)
        v_map = lambda i, j, k: (0, j)
        o_map = lambda i, j, k: (i, j)
        scratch = [pltpu.VMEM((TM, TN), jnp.float32)]
        sem = ("parallel", "parallel", "arbitrary")
        kernel = (_mm_res_kernel if has_res
                  else functools.partial(_mm_kernel, relu=relu))

    in_specs = [
        pl.BlockSpec((TM, TK), a_map),    # A (im2col rows / activations)
        pl.BlockSpec((TK, TN), b_map),    # B (packed weights)
        pl.BlockSpec((1, TN), v_map),     # folded BN scale
        pl.BlockSpec((1, TN), v_map),     # folded BN bias
    ]
    if has_res:
        in_specs.append(pl.BlockSpec((TM, TN), o_map))

    f = pl.pallas_call(
        kernel,
        out_shape=jax.ShapeDtypeStruct((M_pad, N_pad), out_dt),
        grid_spec=pltpu.PrefetchScalarGridSpec(
            num_scalar_prefetch=0,
            grid=grid,
            in_specs=in_specs,
            out_specs=pl.BlockSpec((TM, TN), o_map),
            scratch_shapes=scratch,
        ),
        compiler_params=pltpu.CompilerParams(
            dimension_semantics=sem,
            vmem_limit_bytes=_vmem_limit(fp)),
    )
    return jax.jit(f)


@functools.lru_cache(maxsize=None)
def _get_deconv_hm_fn(M_pad, K_pad, NF, NH, TM):
    # Single K step (K_pad = 4 * 256 = 1024 for the last deconv layer).
    assert K_pad <= 1024, "fused deconv+heatmap kernel expects a single K step"
    grid = (M_pad // TM,)
    fp = (2 * (TM * K_pad * 2 + TM * NH * 4)
          + 2 * (K_pad * NF * 2 + NF * NH * 2 + 4 * NF * 4 + NH * 4))
    in_specs = [
        pl.BlockSpec((TM, K_pad), lambda i: (i, 0)),   # A
        pl.BlockSpec((K_pad, NF), lambda i: (0, 0)),   # deconv phase weights
        pl.BlockSpec((1, NF), lambda i: (0, 0)),       # BN scale
        pl.BlockSpec((1, NF), lambda i: (0, 0)),       # BN bias
        pl.BlockSpec((NF, NH), lambda i: (0, 0)),      # heatmap weights
        pl.BlockSpec((1, NH), lambda i: (0, 0)),       # heatmap bias
    ]
    f = pl.pallas_call(
        _mm_hm_kernel,
        out_shape=jax.ShapeDtypeStruct((M_pad, NH), jnp.float32),
        grid_spec=pltpu.PrefetchScalarGridSpec(
            num_scalar_prefetch=0,
            grid=grid,
            in_specs=in_specs,
            out_specs=pl.BlockSpec((TM, NH), lambda i: (i, 0)),
        ),
        compiler_params=pltpu.CompilerParams(
            dimension_semantics=("parallel",),
            vmem_limit_bytes=_vmem_limit(fp)),
    )
    return jax.jit(f)


@functools.lru_cache(maxsize=None)
def _get_maxpool_fn(M_pad, C_pad, TM, dtype):
    f = pl.pallas_call(
        _maxpool_kernel,
        out_shape=jax.ShapeDtypeStruct((M_pad, C_pad), dtype),
        grid_spec=pltpu.PrefetchScalarGridSpec(
            num_scalar_prefetch=0,
            grid=(M_pad // TM,),
            in_specs=[pl.BlockSpec((3, TM, C_pad), lambda i: (0, i, 0))],
            out_specs=pl.BlockSpec((TM, C_pad), lambda i: (i, 0)),
        ),
        compiler_params=pltpu.CompilerParams(dimension_semantics=("parallel",)),
    )
    return jax.jit(f)


# ----------------------------------------------------------------------------
# Matmul / conv wrappers (im2col glue in plain JAX, matmul on the MXU)
# ----------------------------------------------------------------------------

def _matmul_prepacked(cols, cw, relu, residual, out_dtype):
    """out = relu?((cols @ B) * scale + bias [+ residual]) with prepacked B.

    Returns the channel-PADDED output (N_pad lanes); padded channels are 0.
    """
    M, K = cols.shape
    K_pad, N_pad = cw['B'].shape
    M_pad, TM = _tm_for(M)
    TK = _tk_for(K_pad)
    TN = _tn_for(N_pad, M_pad // TM)

    A = cols
    if M_pad != M or K_pad != K:
        A = jnp.pad(A, ((0, M_pad - M), (0, K_pad - K)))
    args = [A, cw['B'], cw['scale'], cw['bias']]

    has_res = residual is not None
    if has_res:
        r = residual
        if M_pad != M:
            r = jnp.pad(r, ((0, M_pad - M), (0, 0)))
        args.append(r)

    fn = _get_matmul_fn(M_pad, K_pad, N_pad, TM, TK, TN,
                        bool(relu), has_res, jnp.dtype(out_dtype).name)
    out = fn(*args)
    if M_pad != M:
        out = out[:M]
    return out


def _im2col(x, kh, kw, stride, pad):
    if kh == 1 and kw == 1 and pad == 0:
        xs = x[:, ::stride, ::stride, :] if stride > 1 else x
        N, oh, ow, C = xs.shape
        return xs.reshape(N * oh * ow, C), (N, oh, ow)
    if pad:
        x = jnp.pad(x, ((0, 0), (pad, pad), (pad, pad), (0, 0)))
    N, H, W, C = x.shape
    oh = (H - kh) // stride + 1
    ow = (W - kw) // stride + 1
    patches = []
    for i in range(kh):
        for j in range(kw):
            patches.append(x[:, i:i + stride * oh:stride,
                              j:j + stride * ow:stride, :])
    cols = jnp.stack(patches, axis=3)                    # (N, oh, ow, kh*kw, C)
    return cols.reshape(N * oh * ow, kh * kw * C), (N, oh, ow)


def conv2d_prepacked(x, cw, stride, pad, relu, residual=None,
                     out_dtype=jnp.bfloat16):
    """Conv + folded BN (+ optional fused residual add + ReLU).

    Input/output activations carry their 128-lane channel padding (padded
    channels are exactly zero), so no per-layer pad/slice HBM round trips.
    """
    cols, (N, oh, ow) = _im2col(x, cw['kh'], cw['kw'], stride, pad)
    res2 = None
    if residual is not None:
        res2 = residual.reshape(-1, residual.shape[-1])
    out = _matmul_prepacked(cols, cw, relu, res2, out_dtype)
    return out.reshape(N, oh, ow, out.shape[-1])


def maxpool_3x3_s2_p1(x):
    """nn.MaxPool2d(kernel_size=3, stride=2, padding=1) on NHWC input.

    Stage 1 (fused XLA elementwise): 3-tap max along W at stride 2.
    Stage 2 (Pallas kernel): 3-tap max along H at stride 2.
    Only a 3x (not 9x) staging buffer is materialized.
    """
    N, H, W, C = x.shape
    oh = (H + 2 - 3) // 2 + 1
    ow = (W + 2 - 3) // 2 + 1
    xp = jnp.pad(x, ((0, 0), (1, 1), (1, 1), (0, 0)),
                 constant_values=-jnp.inf)
    tmp = jnp.maximum(
        jnp.maximum(xp[:, :, 0:2 * ow - 1:2, :], xp[:, :, 1:2 * ow:2, :]),
        xp[:, :, 2:2 * ow + 1:2, :])                     # (N, H+2, ow, C)
    rows = [tmp[:, d:d + 2 * oh - 1:2, :, :] for d in range(3)]
    M = N * oh * ow
    p = jnp.stack(rows, axis=0).reshape(3, M, C)
    M_pad, TM = _tm_for(M)
    if M_pad != M:
        p = jnp.pad(p, ((0, 0), (0, M_pad - M), (0, 0)))
    out = _get_maxpool_fn(M_pad, C, TM, p.dtype)(p)
    if M_pad != M:
        out = out[:M]
    return out.reshape(N, oh, ow, C)


# --- ConvTranspose2d(k=4, s=2, p=1) via sub-pixel phase decomposition -------
# Output phase (py, px) in {0,1}^2 equals a 2x2 conv over the (zero-padded,
# shifted) input with kernel taps (3,1) for phase 0 and (2,0) for phase 1.

_PHASE_TAPS = {0: (3, 1), 1: (2, 0)}


def _deconv_phase_heatmap(xs, cw, hm):
    """One deconv phase conv with the heatmap 1x1 conv fused into the epilogue."""
    cols, (N, oh, ow) = _im2col(xs, cw['kh'], cw['kw'], 1, 0)
    M, K = cols.shape
    K_pad, NF = cw['B'].shape
    NH = hm['B'].shape[1]
    M_pad, TM = _tm_for(M)
    A = cols
    if M_pad != M or K_pad != K:
        A = jnp.pad(A, ((0, M_pad - M), (0, K_pad - K)))
    fn = _get_deconv_hm_fn(M_pad, K_pad, NF, NH, TM)
    out = fn(A, cw['B'], cw['scale'], cw['bias'], hm['B'], hm['bias'])
    if M_pad != M:
        out = out[:M]
    return out.reshape(N, oh, ow, NH)


def conv_transpose_phase_bn(x, phases, relu=True, heatmap=None):
    """ConvTranspose(4,2,1)+BN+ReLU via 4 phase convs + one depth-to-space.

    When `heatmap` is given (last deconv), the 1x1 heatmap conv is fused into
    each phase's matmul epilogue and the returned tensor holds the heatmap
    channels (f32, lane-padded)."""
    N, H, W, C = x.shape
    xp = jnp.pad(x, ((0, 0), (1, 1), (1, 1), (0, 0)))
    outs = []
    for py in (0, 1):
        for px in (0, 1):
            xs = xp[:, py:py + H + 1, px:px + W + 1, :]
            if heatmap is None:
                o_ph = conv2d_prepacked(xs, phases[(py, px)],
                                        stride=1, pad=0, relu=relu)
            else:
                o_ph = _deconv_phase_heatmap(xs, phases[(py, px)], heatmap)
            outs.append(o_ph)
    C_out = outs[0].shape[-1]
    # depth-to-space: (N,H,W,2,2,C) -> (N,H,2,W,2,C) -> (N,2H,2W,C)
    o = jnp.stack(outs, axis=3).reshape(N, H, W, 2, 2, C_out)
    o = jnp.transpose(o, (0, 1, 3, 2, 4, 5)).reshape(N, 2 * H, 2 * W, C_out)
    return o


# ----------------------------------------------------------------------------
# Parameter construction (matches module's __init__ shapes) + one-time packing
# ----------------------------------------------------------------------------

class KeyGen:
    def __init__(self, seed):
        self._key = jax.random.PRNGKey(seed)

    def __call__(self):
        self._key, k = jax.random.split(self._key)
        return k


def _init_conv(key, O, C, kh, kw):
    n = kh * kw * O
    return (jax.random.normal(key, (O, C, kh, kw), jnp.float32)
            * math.sqrt(2.0 / n))


def _init_deconv(key, C_in, C_out, kh, kw):
    n = kh * kw * C_out
    return (jax.random.normal(key, (C_in, C_out, kh, kw), jnp.float32)
            * math.sqrt(2.0 / n))


def _bn_identity(c):
    # gamma=1, beta=0, running_mean=0, running_var=1 -> folded scale/bias
    scale = jnp.full((c,), 1.0 / math.sqrt(1.0 + _BN_EPS), jnp.float32)
    bias = jnp.zeros((c,), jnp.float32)
    return scale, bias


def build_params(seed=0, num_classes=17, num_feats=256):
    kg = KeyGen(seed)
    p = {}
    p['conv1_w'] = _init_conv(kg(), 64, 3, 7, 7)
    p['bn1'] = _bn_identity(64)

    inplanes = 64
    layers = []
    for planes, nblocks, stride in [(64, 3, 1), (128, 4, 2),
                                    (256, 6, 2), (512, 3, 2)]:
        layer = []
        for b in range(nblocks):
            s = stride if b == 0 else 1
            blk = {
                'stride': s,
                'conv1_w': _init_conv(kg(), planes, inplanes, 1, 1),
                'bn1': _bn_identity(planes),
                'conv2_w': _init_conv(kg(), planes, planes, 3, 3),
                'bn2': _bn_identity(planes),
                'conv3_w': _init_conv(kg(), planes * 4, planes, 1, 1),
                'bn3': _bn_identity(planes * 4),
            }
            if s != 1 or inplanes != planes * 4:
                blk['down_w'] = _init_conv(kg(), planes * 4, inplanes, 1, 1)
                blk['bnd'] = _bn_identity(planes * 4)
            layer.append(blk)
            inplanes = planes * 4
        layers.append(layer)
    p['layers'] = layers

    deconv = []
    in_ch = 2048
    for _ in range(3):
        deconv.append({'w': _init_deconv(kg(), in_ch, num_feats, 4, 4),
                       'bn': _bn_identity(num_feats)})
        in_ch = num_feats
    p['deconv'] = deconv

    p['hm_w'] = _init_conv(kg(), num_classes, num_feats, 1, 1)
    bnd = 1.0 / math.sqrt(num_feats)
    p['hm_b'] = jax.random.uniform(kg(), (num_classes,), jnp.float32, -bnd, bnd)
    return p


def _pack_conv(w, scale, bias, cin_pad=True):
    """w (O, C, kh, kw) torch layout -> padded bf16 (K_pad, N_pad) B matrix.

    With cin_pad=True the weight is packed against the 128-padded input
    channel count, so channel-padded activations can be consumed directly.
    """
    O, C, kh, kw = w.shape
    Cp = _rup(C, 128) if cin_pad else C
    B = jnp.transpose(w, (2, 3, 1, 0))                   # (kh, kw, C, O)
    if Cp != C:
        B = jnp.pad(B, ((0, 0), (0, 0), (0, Cp - C), (0, 0)))
    B = B.reshape(kh * kw * Cp, O)
    K = kh * kw * Cp
    K_pad = _rup(K, 128)
    N_pad = _rup(O, 128)
    Bp = jnp.pad(B, ((0, K_pad - K), (0, N_pad - O))).astype(jnp.bfloat16)
    s_p = jnp.pad(scale.reshape(1, O).astype(jnp.float32),
                  ((0, 0), (0, N_pad - O)))
    c_p = jnp.pad(bias.reshape(1, O).astype(jnp.float32),
                  ((0, 0), (0, N_pad - O)))
    return {'B': Bp, 'scale': s_p, 'bias': c_p, 'N': O, 'kh': kh, 'kw': kw}


def _pack_deconv_phases(w, scale, bias):
    """w (C_in, C_out, 4, 4) ConvTranspose weight -> 4 packed 2x2 phase convs."""
    phases = {}
    for py in (0, 1):
        ty = jnp.array(_PHASE_TAPS[py])
        for px in (0, 1):
            tx = jnp.array(_PHASE_TAPS[px])
            sub = w[:, :, ty, :][:, :, :, tx]            # (C_in, C_out, 2, 2)
            w_conv = jnp.transpose(sub, (1, 0, 2, 3))    # (C_out, C_in, 2, 2)
            phases[(py, px)] = _pack_conv(w_conv, scale, bias)
    return phases


def _pack_heatmap(w, b):
    """1x1 heatmap conv packed for the fused deconv+heatmap epilogue."""
    O, C = w.shape[0], w.shape[1]
    N_pad = _rup(O, 128)
    B = jnp.transpose(w.reshape(O, C), (1, 0))           # (C, O)
    Bp = jnp.pad(B, ((0, 0), (0, N_pad - O))).astype(jnp.bfloat16)
    bp = jnp.pad(b.reshape(1, O).astype(jnp.float32), ((0, 0), (0, N_pad - O)))
    return {'B': Bp, 'bias': bp, 'N': O}


def prepare_params(raw):
    p = {'conv1': _pack_conv(raw['conv1_w'], *raw['bn1'], cin_pad=False)}
    layers = []
    for layer in raw['layers']:
        blocks = []
        for blk in layer:
            b = {'stride': blk['stride'],
                 'conv1': _pack_conv(blk['conv1_w'], *blk['bn1']),
                 'conv2': _pack_conv(blk['conv2_w'], *blk['bn2']),
                 'conv3': _pack_conv(blk['conv3_w'], *blk['bn3'])}
            if 'down_w' in blk:
                b['down'] = _pack_conv(blk['down_w'], *blk['bnd'])
            blocks.append(b)
        layers.append(blocks)
    p['layers'] = layers
    p['deconv'] = [_pack_deconv_phases(d['w'], *d['bn'])
                   for d in raw['deconv']]
    p['heatmap'] = _pack_heatmap(raw['hm_w'], raw['hm_b'])
    p['num_classes'] = int(raw['hm_w'].shape[0])
    return p


# ----------------------------------------------------------------------------
# Forward pass
# ----------------------------------------------------------------------------

def bottleneck_forward(x, blk):
    s = blk['stride']
    out = conv2d_prepacked(x, blk['conv1'], stride=1, pad=0, relu=True)
    out = conv2d_prepacked(out, blk['conv2'], stride=s, pad=1, relu=True)
    if 'down' in blk:
        res = conv2d_prepacked(x, blk['down'], stride=s, pad=0, relu=False)
    else:
        res = x
    # final 1x1 conv with fused residual add + ReLU in the matmul epilogue
    return conv2d_prepacked(out, blk['conv3'], stride=1, pad=0, relu=True,
                            residual=res)


def deconv_resnet_forward(params, x_nchw):
    x = jnp.transpose(x_nchw, (0, 2, 3, 1)).astype(jnp.bfloat16)  # NCHW->NHWC
    # backbone (activations carry 128-lane channel padding after conv1)
    x = conv2d_prepacked(x, params['conv1'], stride=2, pad=3, relu=True)
    x = maxpool_3x3_s2_p1(x)
    for layer in params['layers']:
        for blk in layer:
            x = bottleneck_forward(x, blk)
    # deconv head (3 x ConvTranspose k4 s2 p1 + BN + ReLU, phase decomposed);
    # the 1x1 heatmap conv is fused into the last deconv layer.
    deconv = params['deconv']
    x = conv_transpose_phase_bn(x, deconv[0], relu=True)
    x = conv_transpose_phase_bn(x, deconv[1], relu=True)
    hm = conv_transpose_phase_bn(x, deconv[2], relu=True,
                                 heatmap=params['heatmap'])
    hm = hm[..., :params['num_classes']]                 # drop lane padding
    return jnp.transpose(hm, (0, 3, 1, 2))               # NHWC->NCHW, f32


if __name__ == "__main__":
    raw = build_params(seed=0, num_classes=17, num_feats=256)
    params = prepare_params(raw)

    fwd = jax.jit(lambda inp: deconv_resnet_forward(params, inp))

    key = jax.random.PRNGKey(0)
    # small but /32-compatible input; PyTorch-style NCHW
    x = jax.random.normal(key, (2, 3, 64, 64), jnp.float32)
    out = jax.block_until_ready(fwd(x))
    assert out.shape == (2, 17, 16, 16), out.shape
    assert out.dtype == jnp.float32, out.dtype
    assert bool(jnp.all(jnp.isfinite(out)))
    print("KERNEL_OK")
</pallas_src>

<mosaic_0001>
module attributes {stable_mosaic.version = 11 : i64} {
  func.func @_mm_kernel_1k(%arg0: i32, %arg1: i32, %arg2: memref<1024x256xbf16, #tpu.memory_space<vmem>>, %arg3: memref<256x128xbf16, #tpu.memory_space<vmem>>, %arg4: memref<1x128xf32, #tpu.memory_space<vmem>>, %arg5: memref<1x128xf32, #tpu.memory_space<vmem>>, %arg6: memref<1024x128xbf16, #tpu.memory_space<vmem>>) attributes {dimension_semantics = [#tpu.dimension_semantics<parallel>, #tpu.dimension_semantics<parallel>], iteration_bounds = array<i64: 2, 1>, scalar_prefetch = 0 : i64, scratch_operands = 0 : i64, tpu.core_type = #tpu.core_type<tc>, window_params = [{transform_indices = @transform_0, window_bounds = array<i64: 1024, 256>}, {transform_indices = @transform_1, window_bounds = array<i64: 256, 128>}, {transform_indices = @transform_2, window_bounds = array<i64: 1, 128>}, {transform_indices = @transform_3, window_bounds = array<i64: 1, 128>}, {transform_indices = @transform_4, window_bounds = array<i64: 1024, 128>}]} {
    %c0 = arith.constant 0 : index
    %c0_0 = arith.constant 0 : index
    %0 = vector.load %arg2[%c0, %c0_0] : memref<1024x256xbf16, #tpu.memory_space<vmem>>, vector<1024x256xbf16>
    %c0_1 = arith.constant 0 : index
    %c0_2 = arith.constant 0 : index
    %1 = vector.load %arg3[%c0_1, %c0_2] : memref<256x128xbf16, #tpu.memory_space<vmem>>, vector<256x128xbf16>
    %cst = arith.constant dense<0.000000e+00> : vector<1024x128xf32>
    %2 = tpu.matmul %0, %1, %cst {dimension_numbers = #tpu.dot_dimension_numbers<[1], [0], [0], [1], [0, 0, 1, 1], [], []>} : vector<1024x256xbf16>, vector<256x128xbf16>, vector<1024x128xf32> -> vector<1024x128xf32>
    %c0_3 = arith.constant 0 : index
    %c0_4 = arith.constant 0 : index
    %3 = vector.load %arg4[%c0_3, %c0_4] : memref<1x128xf32, #tpu.memory_space<vmem>>, vector<1x128xf32>
    %4 = vector.broadcast %3 : vector<1x128xf32> to vector<1024x128xf32>
    %5 = arith.mulf %2, %4 : vector<1024x128xf32>
    %c0_5 = arith.constant 0 : index
    %c0_6 = arith.constant 0 : index
    %6 = vector.load %arg5[%c0_5, %c0_6] : memref<1x128xf32, #tpu.memory_space<vmem>>, vector<1x128xf32>
    %7 = vector.broadcast %6 : vector<1x128xf32> to vector<1024x128xf32>
    %8 = arith.addf %5, %7 : vector<1024x128xf32>
    %cst_7 = arith.constant 0.000000e+00 : f32
    %9 = vector.broadcast %cst_7 : f32 to vector<1024x128xf32>
    %10 = arith.maximumf %8, %9 : vector<1024x128xf32>
    %11 = arith.truncf %10 : vector<1024x128xf32> to vector<1024x128xbf16>
    %c0_8 = arith.constant 0 : index
    %c0_9 = arith.constant 0 : index
    %12 = vector.load %arg6[%c0_8, %c0_9] : memref<1024x128xbf16, #tpu.memory_space<vmem>>, vector<1024x128xbf16>
    tpu.vector_store %arg6[%c0_8, %c0_9], %11 {strides = array<i32>} : memref<1024x128xbf16, #tpu.memory_space<vmem>>, vector<1024x128xbf16>,
    return
  }
  func.func @transform_0(%arg0: i32, %arg1: i32) -> (i32, i32) {
    %c0_i32 = arith.constant 0 : i32
    %c0_i32_0 = arith.constant 0 : i32
    return %arg0, %c0_i32 : i32, i32
  }
  func.func @transform_1(%arg0: i32, %arg1: i32) -> (i32, i32) {
    %c0_i32 = arith.constant 0 : i32
    %c0_i32_0 = arith.constant 0 : i32
    return %c0_i32, %arg1 : i32, i32
  }
  func.func @transform_2(%arg0: i32, %arg1: i32) -> (i32, i32) {
    %c0_i32 = arith.constant 0 : i32
    %c0_i32_0 = arith.constant 0 : i32
    return %c0_i32, %arg1 : i32, i32
  }
  func.func @transform_3(%arg0: i32, %arg1: i32) -> (i32, i32) {
    %c0_i32 = arith.constant 0 : i32
    %c0_i32_0 = arith.constant 0 : i32
    return %c0_i32, %arg1 : i32, i32
  }
  func.func @transform_4(%arg0: i32, %arg1: i32) -> (i32, i32) {
    %c0_i32 = arith.constant 0 : i32
    return %arg0, %arg1 : i32, i32
  }
}

</mosaic_0001>

<bundles_post_ra>
// kernel: tpu_custom_call.1
= control target key start
LH: loop header
LB: loop body
LE: loop exit
PB: predicated region body
PF: predicated region fallthrough
CT: control target
= control target key end

     0   :  { %s4889_s0 = inlined_call_operand.hbm [shape: bf16[2048,256], index: 0, kind: input, shape index: {}]   ;;  %s4890_s1 = inlined_call_operand.hbm [shape: bf16[256,128], index: 1, kind: input, shape index: {}]   ;;  %s4891_s2 = inlined_call_operand.vmem [shape: f32[1,128], index: 2, kind: input, shape index: {}]   ;;  %s4892_s3 = inlined_call_operand.vmem [shape: f32[1,128], index: 3, kind: input, shape index: {}]   ;;  %s4893_s4 = inlined_call_operand.hbm [shape: bf16[2048,128], index: 4, kind: output, shape index: {}]  }
   0x1   :  { %4895 = sst [smem:[#allocation11_spill]] %s4890_s1 }
   0x2   :  { %9 = vsyncpa [#allocation3], 0 }
   0x3   :  { %11 = vsyncpa [#allocation3 + $0x1], 0 }
   0x4   :  { %12 = vsyncpa [#allocation6], 0 }
   0x5   :  { %13 = vsyncpa [#allocation4], 0 }
   0x6   :  { %15 = vsyncpa [#allocation4 + $0x1], 0  ;;  %s4202_s15 = smov 0   ;;  %s4204_s16 = smov 0  }
   0x7   :  { %s4206_s17 = smov 0   ;;  %s4208_s18 = smov 0  }
   0x8   :  { %s4210_s19 = smov 0   ;;  %s4212_s20 = smov 0  }
   0x9 LB: > { %s2897_s21 = sadd.s32 4294967295, %s4165_s20   ;;  %s2898_s22 = sadd.s32 4294967294, %s4165_s20   ;;  %s4165_s20 = sphi %s4212_s20, %s21_s20   ;;  %s4161_s19 = sphi %s4210_s19, %s4913_s19   ;;  %s4157_s18 = sphi %s4208_s18, %s4912_s18   ;;  %s4153_s17 = sphi %s4206_s17, %s4911_s17   ;;  %s4149_s16 = sphi %s4204_s16, %s4910_s16   ;;  %s4145_s15 = sphi %s4202_s15, %s4909_s15  }
   0xa   : > { %p53_p0 = scmp.ne.s32.totalorder %s4149_s16, %s4145_s15  ;;  %p4236_p1 = scmp.eq.s32.totalorder %s2897_s21, 0 }
   0xb   : > { %p4240_p2 = scmp.eq.s32.totalorder %s2897_s21, 1  ;;  %p163_p3 = scmp.eq.s32.totalorder %s2898_s22, 1 }
   0xc   : > { %p4246_p4 = por %p4236_p1, %p53_p0  ;;  %p2899_p5 = scmp.ge.s32.totalorder %s4165_s20, 1 }
   0xd   : > { %p4251_p6 = por %p163_p3, %p53_p0  ;;  %p170_p7 = scmp.lt.s32.totalorder %s4165_s20, 3 }
   0xe   : > { %s4898_s25 = scalar_select %p4246_p4, 1, 0 }
   0xf   : > { %s4899_s26 = scalar_select %p4251_p6, 1, 0 }
  0x10   : > { %p4256_p8 = pnand %p2899_p5, %p170_p7  ;;  %s4167_s28 = smov [#allocation5]  }
  0x11   : > { %s184_s29 = sshll.u32 %s4167_s28, 4  ;;  %s33_s5 = sadd.s32 1, %s4161_s19  ;;  %s185_s29 = int_to_ptr.vmem [resolvable:$true] %s184_s29 }
  0x12   : > { %p3745_p9 = pneg %p4256_p8  ;;  %s4038_s6 = scalar_lea.vmem %s185_s29, 2048 }
  0x13   : > { %p4039_p13 = scmp.ne.s32.totalorder %s185_s29, %s4038_s6  ;;  %p4046_p5 = scmp.lt.s32.totalorder %s185_s29, %s185_s29 }
  0x14   : > { %p4265_p11 = pnand %p3745_p9, %p4236_p1  ;;  %p4047_p7 = scmp.lt.s32.totalorder %s4038_s6, %s4038_s6 }
  0x16   : > { %p4029_p12 = pneg %p4265_p11  ;;  %p4048_p6 = por %p4047_p7, %p4046_p5 }
  0x18   : > { %p4041_p0 = pnand %p4039_p13, %p4029_p12 }
  0x1a   : > { %p4042_p3 = pneg %p4041_p0 }
  0x1c   : > { %p4049_p4 = pnand %p4048_p6, %p4042_p3 }
  0x1e   : > { %4052 = shalt.err (!%p4049_p4)
}
  0x1f   : > { %s4168_s7 = smov 64   ;;  %s4169_s8 = smov 4  }
  0x20   : > { %s4902_s1 = sld [smem:[#allocation11_spill]]  ;;  %p35_p6 = scmp.ge.s32.totalorder %s33_s5, 2 }
  0x21   : > { %s40_s11 = sadd.s32 1, %s4153_s17  ;;  %p47_p4 = scmp.ne.s32.totalorder %s4153_s17, %s4149_s16 }
  0x22   : > { %p48_p9 = scmp.eq.s32.totalorder %s4165_s20, 0  ;;  %s4915_s5 = smov (%p35_p6, %s33_s5), 0 }
  0x23   : > { %p4289_p13 = por %p4240_p2, %p47_p4  ;;  %s37_s14 = ssub.s32 %s4161_s19, %s4915_s5 }
  0x24   : > { %p4283_p12 = por %p48_p9, %p47_p4  ;;  %p3758_p0 = scmp.lt.s32.totalorder %s4165_s20, 2 }
  0x25   : > { %s210_s21 = sand.u32 1, %s4153_s17  }
  0x26   : > { %3748 = dma.hbm_to_vmem [thread:$0]  (!%p4265_p11), %s4902_s1, 2048, %s185_s29, [#allocation6], %s4168_s7, %s4168_s7, %s4169_s8  }
  0x27   : > { %p38_p11 = scmp.eq.s32.totalorder %s37_s14, 0  ;;  %s2904_s22 = sshll.u32 %s210_s21, 10 }
  0x28   : > { %s3192_s29 = sshll.u32 %s4161_s19, 14  ;;  %s214_s8 = scalar_lea.vmem [#allocation2], %s2904_s22 }
  0x29   : > { %s4298_s28 = scalar_select %p38_p11, %s4153_s17, %s40_s11  }
  0x2a   : > { %s221_s7 = scalar_lea.hbm %s4889_s0, %s3192_s29  ;;  %s222_s9 = sshll.u32 %s214_s8, 4  ;;  %s223_s9 = int_to_ptr.vmem [resolvable:$true] %s222_s9 }
  0x2b   : > { %p4306_p2 = pnand %p3758_p0, %p4283_p12  ;;  %s211_s10 = scalar_lea.sflag [#allocation3], %s210_s21 }
  0x2c   : > { %s4066_s14 = scalar_lea.vmem %s223_s9, 16384  ;;  %s4170_s11 = smov [#allocation2]  }
  0x2d   : > { %p4055_p3 = pneg %p4306_p2  ;;  %p4067_p5 = scmp.ne.s32.totalorder %s223_s9, %s4066_s14 }
  0x2e   : > { %s4071_s1 = sshll.u32 %s4170_s11, 4  ;;  %s4072_s1 = int_to_ptr.vmem [resolvable:$false] %s4071_s1 }
  0x2f   : > { %p4069_p7 = pnand %p4067_p5, %p4055_p3  ;;  %s4073_s29 = scalar_lea.vmem %s4072_s1, 32768 }
  0x30   : > { %p4074_p4 = scmp.lt.s32.totalorder %s223_s9, %s4072_s1  ;;  %p4075_p9 = scmp.lt.s32.totalorder %s4073_s29, %s4066_s14 }
  0x31   : > { %p4070_p6 = pneg %p4069_p7 }
  0x32   : > { %p4076_p11 = por %p4075_p9, %p4074_p4 }
  0x34   : > { %p4077_p10 = pnand %p4076_p11, %p4070_p6 }
  0x36   : > { %4080 = shalt.err (!%p4077_p10)
}
  0x37   : > { %s4171_s12 = smov 128   ;;  %s4172_s22 = smov 8  }
  0x38   : > { %3752 = dma.hbm_to_vmem [thread:$0]  (!%p4306_p2), %s221_s7, 16384, %s223_s9, %s211_s10, %s4171_s12, %s4171_s12, %s4172_s22  }
  0x39   : > { %234 = sbr.rel (%p4256_p8) target bundleno = 597 (0x255), region = 36  ;;  %s4317_s21 = sand.u32 (!%p4256_p8), 1, %s4149_s16  }
  0x3a   : > { %s2909_s30 = sshll.u32 (!%p4256_p8), %s4317_s21, 10  ;;  %s237_s1 = scalar_lea.sflag (!%p4256_p8), [#allocation3], %s4317_s21 }
  0x3b   : > { %s4321_s6 = scalar_lea.vmem (!%p4256_p8), [#allocation2], %s2909_s30  ;;  %p4906_p12 = scmp.ne.s32.totalorder (!%p4256_p8), %s4898_s25, 0 }
  0x3e   : > { %4132 = dma.done.wait (%p4906_p12), %s237_s1, 16384  }
  0x3f   : > { %4134 = vsyncadd (%p4906_p12), %s237_s1, 4294950912 }
  0x40   : > { %4136 = dma.done.wait (%p4236_p1), [#allocation6], 2048  }
  0x41   : > { %4138 = vsyncadd (%p4236_p1), [#allocation6], 4294965248  ;;  %v4173_v0 = vmov 0   ;;  %v3817_v1 = vld [vmem:[#allocation5 + $0x38] sm:$0xff]   ;;  %v3818_v2 = vld [vmem:[#allocation5 + $0x30] sm:$0xff]   ;;  %s2911_s8 = sshll.u32 %s4317_s21, 9 }
  0x42   : > { %1180 = vmatprep.subr.bf16.mxu0 %v4173_v0  ;;  %3705 = vmatprep.subr.bf16.mxu1 %v4173_v0  ;;  %v3819_v3 = vld [vmem:[#allocation5 + $0x28] sm:$0xff]   ;;  %v3820_v4 = vld [vmem:[#allocation5 + $0x20] sm:$0xff]   ;;  %v3821_v5 = vld [vmem:[#allocation5 + $0x18] sm:$0xff]   ;;  %s4494_s9 = scalar_lea.vmem [#allocation7], %s2911_s8  ;;  %s3321_s29 = sshll.u32 %s4157_s18, 13 }
  0x43   : > { %1181 = vmatpush1.bf16.msra.mxu0 %v3817_v1  ;;  %3721 = vmatpush1.bf16.msra.mxu1 %v3817_v1  ;;  %v3835_v6 = vld [vmem:[%s4321_s6 + $0x4] ss:$8 sps:$4 sm:$0xff]   ;;  %v3822_v7 = vld [vmem:[#allocation5 + $0x10] sm:$0xff]   ;;  %v3825_v11 = vld [vmem:[#allocation5 + $0x78] sm:$0xff]   ;;  %s2778_s12 = sshll.u32 %s4494_s9, 4  ;;  %s4837_s1 = scalar_lea.hbm %s4893_s4, %s3321_s29  ;;  %s4839_s12 = int_to_ptr.vmem [resolvable:$true] %s2778_s12 }
  0x44   : > { %1182 = vmatprep.subr.bf16.mxu0 %v4173_v0  ;;  %3706 = vmatprep.subr.bf16.mxu1 %v4173_v0  ;;  %v3838_v8 = vld [vmem:[%s4321_s6 + $0x204] ss:$8 sps:$4 sm:$0xff]   ;;  %v3826_v12 = vld [vmem:[#allocation5 + $0x70] sm:$0xff]   ;;  %v3829_v15 = vld [vmem:[#allocation5 + $0x58] sm:$0xff]   ;;  %s2764_s18 = scalar_lea.sflag [#allocation4], %s4317_s21  ;;  %s4174_s23 = smov [#allocation7]  }
  0x45   : > { %1212 = vmatprep.mubr.bf16.mxu0 %v3835_v6  ;;  %1468 = vmatprep.mubr.bf16.mxu1 %v3838_v8  ;;  %v3823_v9 = vld [vmem:[#allocation5 + $0x8] sm:$0xff]   ;;  %v3824_v10 = vld [vmem:[#allocation5] sm:$0xff]   ;;  %v3830_v16 = vld [vmem:[#allocation5 + $0x50] sm:$0xff]   ;;  %s4085_s25 = sshll.u32 %s4174_s23, 4  ;;  %s4086_s25 = int_to_ptr.vmem [resolvable:$false] %s4085_s25 }
  0x46   : > { %v3827_v13 = vld [vmem:[#allocation5 + $0x68] sm:$0xff]   ;;  %v3828_v14 = vld [vmem:[#allocation5 + $0x60] sm:$0xff]   ;;  %v3839_v21 = vld [vmem:[%s4321_s6 + $0x14] ss:$8 sps:$4 sm:$0xff]   ;;  %s4087_s27 = scalar_lea.vmem %s4086_s25, 16384  ;;  %p4088_p0 = scmp.lt.s32.totalorder %s4839_s12, %s4086_s25 }
  0x47   : > { %1183 = vmatpush1.bf16.msra.mxu0 %v3818_v2  ;;  %3722 = vmatpush1.bf16.msra.mxu1 %v3818_v2  ;;  %v3831_v17 = vld [vmem:[#allocation5 + $0x48] sm:$0xff]   ;;  %v3832_v18 = vld [vmem:[#allocation5 + $0x40] sm:$0xff]   ;;  %v3841_v22 = vld [vmem:[%s4321_s6 + $0x214] ss:$8 sps:$4 sm:$0xff]  }
  0x48   : > { %1184 = vmatprep.subr.bf16.mxu0 %v4173_v0  ;;  %3707 = vmatprep.subr.bf16.mxu1 %v4173_v0  ;;  %v3833_v19 = vld [vmem:[%s4321_s6] ss:$8 sps:$4 sm:$0xff]   ;;  %v3843_v23 = vld [vmem:[%s4321_s6 + $0x10] ss:$8 sps:$4 sm:$0xff]   ;;  %v3845_v25 = vld [vmem:[%s4321_s6 + $0x24] ss:$8 sps:$4 sm:$0xff]  }
  0x49   : > { %v3836_v20 = vld [vmem:[%s4321_s6 + $0x200] ss:$8 sps:$4 sm:$0xff]   ;;  %v3844_v24 = vld [vmem:[%s4321_s6 + $0x210] ss:$8 sps:$4 sm:$0xff]   ;;  %v3847_v26 = vld [vmem:[%s4321_s6 + $0x224] ss:$8 sps:$4 sm:$0xff]  }
  0x4a   : > { %v3849_v27 = vld [vmem:[%s4321_s6 + $0x20] ss:$8 sps:$4 sm:$0xff]   ;;  %v3851_v29 = vld [vmem:[%s4321_s6 + $0x34] ss:$8 sps:$4 sm:$0xff]   ;;  %v3855_v31 = vld [vmem:[%s4321_s6 + $0x30] ss:$8 sps:$4 sm:$0xff]  }
  0x4b   : > { %1185 = vmatpush1.bf16.msra.mxu0 %v3819_v3  ;;  %3723 = vmatpush1.bf16.msra.mxu1 %v3819_v3  ;;  %v3850_v28 = vld [vmem:[%s4321_s6 + $0x220] ss:$8 sps:$4 sm:$0xff]   ;;  %v3853_v30 = vld [vmem:[%s4321_s6 + $0x234] ss:$8 sps:$4 sm:$0xff]   ;;  %v3856_v32 = vld [vmem:[%s4321_s6 + $0x230] ss:$8 sps:$4 sm:$0xff]  }
  0x4c   : > { %1186 = vmatprep.subr.bf16.mxu0 %v4173_v0  ;;  %3708 = vmatprep.subr.bf16.mxu1 %v4173_v0  ;;  %v3857_v33 = vld [vmem:[%s4321_s6 + $0x44] ss:$8 sps:$4 sm:$0xff]   ;;  %v3861_v35 = vld [vmem:[%s4321_s6 + $0x40] ss:$8 sps:$4 sm:$0xff]   ;;  %v3863_v37 = vld [vmem:[%s4321_s6 + $0x54] ss:$8 sps:$4 sm:$0xff]  }
  0x4d   : > { %v3859_v34 = vld [vmem:[%s4321_s6 + $0x244] ss:$8 sps:$4 sm:$0xff]   ;;  %v3862_v36 = vld [vmem:[%s4321_s6 + $0x240] ss:$8 sps:$4 sm:$0xff]   ;;  %v3865_v38 = vld [vmem:[%s4321_s6 + $0x254] ss:$8 sps:$4 sm:$0xff]  }
  0x4e   : > { %v3867_v39 = vld [vmem:[%s4321_s6 + $0x50] ss:$8 sps:$4 sm:$0xff]   ;;  %v3869_v41 = vld [vmem:[%s4321_s6 + $0x64] ss:$8 sps:$4 sm:$0xff]   ;;  %v3873_v43 = vld [vmem:[%s4321_s6 + $0x60] ss:$8 sps:$4 sm:$0xff]  }
  0x4f   : > { %1187 = vmatpush1.bf16.msra.mxu0 %v3820_v4  ;;  %3724 = vmatpush1.bf16.msra.mxu1 %v3820_v4  ;;  %v3868_v40 = vld [vmem:[%s4321_s6 + $0x250] ss:$8 sps:$4 sm:$0xff]   ;;  %v3871_v42 = vld [vmem:[%s4321_s6 + $0x264] ss:$8 sps:$4 sm:$0xff]   ;;  %v3874_v44 = vld [vmem:[%s4321_s6 + $0x260] ss:$8 sps:$4 sm:$0xff]  }
  0x50   : > { %1188 = vmatprep.subr.bf16.mxu0 %v4173_v0  ;;  %3709 = vmatprep.subr.bf16.mxu1 %v4173_v0  ;;  %v3875_v45 = vld [vmem:[%s4321_s6 + $0x74] ss:$8 sps:$4 sm:$0xff]   ;;  %v3879_v47 = vld [vmem:[%s4321_s6 + $0x70] ss:$8 sps:$4 sm:$0xff]   ;;  %v3881_v49 = vld [vmem:[%s4321_s6 + $0x84] ss:$8 sps:$4 sm:$0xff]  }
  0x51   : > { %v3877_v46 = vld [vmem:[%s4321_s6 + $0x274] ss:$8 sps:$4 sm:$0xff]   ;;  %v3880_v48 = vld [vmem:[%s4321_s6 + $0x270] ss:$8 sps:$4 sm:$0xff]   ;;  %v3883_v50 = vld [vmem:[%s4321_s6 + $0x284] ss:$8 sps:$4 sm:$0xff]  }
  0x52   : > { %v3885_v51 = vld [vmem:[%s4321_s6 + $0x80] ss:$8 sps:$4 sm:$0xff]   ;;  %v3887_v53 = vld [vmem:[%s4321_s6 + $0x94] ss:$8 sps:$4 sm:$0xff]   ;;  %v3891_v55 = vld [vmem:[%s4321_s6 + $0x90] ss:$8 sps:$4 sm:$0xff]  }
  0x53   : > { %1189 = vmatpush1.bf16.msra.mxu0 %v3821_v5  ;;  %3725 = vmatpush1.bf16.msra.mxu1 %v3821_v5  ;;  %v3886_v52 = vld [vmem:[%s4321_s6 + $0x280] ss:$8 sps:$4 sm:$0xff]   ;;  %v3889_v54 = vld [vmem:[%s4321_s6 + $0x294] ss:$8 sps:$4 sm:$0xff]   ;;  %v3892_v56 = vld [vmem:[%s4321_s6 + $0x290] ss:$8 sps:$4 sm:$0xff]  }
  0x54   : > { %1190 = vmatprep.subr.bf16.mxu0 %v4173_v0  ;;  %3710 = vmatprep.subr.bf16.mxu1 %v4173_v0  ;;  %v3893_v57 = vld [vmem:[%s4321_s6 + $0xa4] ss:$8 sps:$4 sm:$0xff]   ;;  %v3897_v59 = vld [vmem:[%s4321_s6 + $0xa0] ss:$8 sps:$4 sm:$0xff]   ;;  %v3899_v61 = vld [vmem:[%s4321_s6 + $0xb4] ss:$8 sps:$4 sm:$0xff]  }
  0x55   : > { %v3895_v58 = vld [vmem:[%s4321_s6 + $0x2a4] ss:$8 sps:$4 sm:$0xff]   ;;  %v3898_v60 = vld [vmem:[%s4321_s6 + $0x2a0] ss:$8 sps:$4 sm:$0xff]   ;;  %v3901_v62 = vld [vmem:[%s4321_s6 + $0x2b4] ss:$8 sps:$4 sm:$0xff]  }
  0x56   : > { %v3903_v63 = vld [vmem:[%s4321_s6 + $0xb0] ss:$8 sps:$4 sm:$0xff]   ;;  %v3905_v1 = vld [vmem:[%s4321_s6 + $0xc4] ss:$8 sps:$4 sm:$0xff]   ;;  %v3909_v3 = vld [vmem:[%s4321_s6 + $0xc0] ss:$8 sps:$4 sm:$0xff]  }
  0x57   : > { %1191 = vmatpush1.bf16.msra.mxu0 %v3822_v7  ;;  %3726 = vmatpush1.bf16.msra.mxu1 %v3822_v7  ;;  %v3907_v2 = vld [vmem:[%s4321_s6 + $0x2c4] ss:$8 sps:$4 sm:$0xff]   ;;  %v3910_v4 = vld [vmem:[%s4321_s6 + $0x2c0] ss:$8 sps:$4 sm:$0xff]   ;;  %v3911_v5 = vld [vmem:[%s4321_s6 + $0xd4] ss:$8 sps:$4 sm:$0xff]  }
  0x58   : > { %1192 = vmatprep.subr.bf16.mxu0 %v4173_v0  ;;  %3711 = vmatprep.subr.bf16.mxu1 %v4173_v0  ;;  %v3913_v6 = vld [vmem:[%s4321_s6 + $0x2d4] ss:$8 sps:$4 sm:$0xff]   ;;  %v3915_v7 = vld [vmem:[%s4321_s6 + $0xd0] ss:$8 sps:$4 sm:$0xff]  }
  0x59   : > { %v3916_v8 = vld [vmem:[%s4321_s6 + $0x2d0] ss:$8 sps:$4 sm:$0xff]  }
  0x5b   : > { %1193 = vmatpush1.bf16.msra.mxu0 %v3823_v9  ;;  %3727 = vmatpush1.bf16.msra.mxu1 %v3823_v9  ;;  %v3917_v9 = vld [vmem:[%s4321_s6 + $0xe4] ss:$8 sps:$4 sm:$0xff]  }
  0x5c   : > { %1194 = vmatprep.subr.bf16.mxu0 %v4173_v0  ;;  %3712 = vmatprep.subr.bf16.mxu1 %v4173_v0 }
  0x5f   : > { %1195 = vmatpush1.bf16.msra.mxu0 %v3824_v10  ;;  %3728 = vmatpush1.bf16.msra.mxu1 %v3824_v10  ;;  %v3919_v10 = vld [vmem:[%s4321_s6 + $0x2e4] ss:$8 sps:$4 sm:$0xff]  }
  0x60   : > { %1196 = vmatprep.subr.bf16.mxu0 %v4173_v0  ;;  %3713 = vmatprep.subr.bf16.mxu1 %v4173_v0 }
  0x63   : > { %1197 = vmatpush2.bf16.msra.mxu0 %v3825_v11  ;;  %3729 = vmatpush2.bf16.msra.mxu1 %v3825_v11  ;;  %v3921_v11 = vld [vmem:[%s4321_s6 + $0xe0] ss:$8 sps:$4 sm:$0xff]  }
  0x64   : > { %1198 = vmatprep.subr.bf16.mxu0 %v4173_v0  ;;  %3714 = vmatprep.subr.bf16.mxu1 %v4173_v0 }
  0x67   : > { %1199 = vmatpush2.bf16.msra.mxu0 %v3826_v12  ;;  %3730 = vmatpush2.bf16.msra.mxu1 %v3826_v12  ;;  %v3922_v12 = vld [vmem:[%s4321_s6 + $0x2e0] ss:$8 sps:$4 sm:$0xff]  }
  0x68   : > { %1200 = vmatprep.subr.bf16.mxu0 %v4173_v0  ;;  %3715 = vmatprep.subr.bf16.mxu1 %v4173_v0 }
  0x6b   : > { %1201 = vmatpush2.bf16.msra.mxu0 %v3827_v13  ;;  %3731 = vmatpush2.bf16.msra.mxu1 %v3827_v13  ;;  %v3923_v13 = vld [vmem:[%s4321_s6 + $0xf4] ss:$8 sps:$4 sm:$0xff]  }
  0x6c   : > { %1202 = vmatprep.subr.bf16.mxu0 %v4173_v0  ;;  %3716 = vmatprep.subr.bf16.mxu1 %v4173_v0 }
  0x6f   : > { %1203 = vmatpush2.bf16.msra.mxu0 %v3828_v14  ;;  %3732 = vmatpush2.bf16.msra.mxu1 %v3828_v14  ;;  %v3925_v14 = vld [vmem:[%s4321_s6 + $0x2f4] ss:$8 sps:$4 sm:$0xff]  }
  0x70   : > { %1204 = vmatprep.subr.bf16.mxu0 %v4173_v0  ;;  %3717 = vmatprep.subr.bf16.mxu1 %v4173_v0 }
  0x73   : > { %1205 = vmatpush2.bf16.msra.mxu0 %v3829_v15  ;;  %3733 = vmatpush2.bf16.msra.mxu1 %v3829_v15  ;;  %v3927_v15 = vld [vmem:[%s4321_s6 + $0xf0] ss:$8 sps:$4 sm:$0xff]  }
  0x74   : > { %1206 = vmatprep.subr.bf16.mxu0 %v4173_v0  ;;  %3718 = vmatprep.subr.bf16.mxu1 %v4173_v0 }
  0x77   : > { %1207 = vmatpush2.bf16.msra.mxu0 %v3830_v16  ;;  %3734 = vmatpush2.bf16.msra.mxu1 %v3830_v16  ;;  %v3928_v16 = vld [vmem:[%s4321_s6 + $0x2f0] ss:$8 sps:$4 sm:$0xff]  }
  0x78   : > { %1208 = vmatprep.subr.bf16.mxu0 %v4173_v0  ;;  %3719 = vmatprep.subr.bf16.mxu1 %v4173_v0 }
  0x7b   : > { %1209 = vmatpush2.bf16.msra.mxu0 %v3831_v17  ;;  %3735 = vmatpush2.bf16.msra.mxu1 %v3831_v17  ;;  %v3929_v17 = vld [vmem:[%s4321_s6 + $0x104] ss:$8 sps:$4 sm:$0xff]  }
  0x7c   : > { %1210 = vmatprep.subr.bf16.mxu0 %v4173_v0  ;;  %3720 = vmatprep.subr.bf16.mxu1 %v4173_v0  ;;  %v3904_v0 = vld [vmem:[%s4321_s6 + $0x2b0] ss:$8 sps:$4 sm:$0xff]  }
  0x7f   : > { %1211 = vmatpush2.bf16.msra.mxu0 %v3832_v18  ;;  %3736 = vmatpush2.bf16.msra.mxu1 %v3832_v18  ;;  %v3931_v18 = vld [vmem:[%s4321_s6 + $0x304] ss:$8 sps:$4 sm:$0xff]  }
  0x82   : > { %1213 = vmatmul.mubr.bf16.vlgmr.msra.gmra.mxu0 %v3833_v19  ;;  %1469 = vmatmul.mubr.bf16.vlgmr.msra.gmra.mxu1 %v3836_v20  ;;  %v3933_v19 = vld [vmem:[%s4321_s6 + $0x100] ss:$8 sps:$4 sm:$0xff]  }
  0x83   : > { %1220 = vmatprep.mubr.bf16.mxu0 %v3839_v21  ;;  %1476 = vmatprep.mubr.bf16.mxu1 %v3841_v22  ;;  %v3934_v20 = vld [vmem:[%s4321_s6 + $0x300] ss:$8 sps:$4 sm:$0xff]   ;;  %v3935_v21 = vld [vmem:[%s4321_s6 + $0x114] ss:$8 sps:$4 sm:$0xff]  }
  0x84   : > { %v3937_v22 = vld [vmem:[%s4321_s6 + $0x314] ss:$8 sps:$4 sm:$0xff]  }
  0x8a   : > { %1221 = vmatmul.mubr.bf16.gmra.mxu0 %v3843_v23  ;;  %1477 = vmatmul.mubr.bf16.gmra.mxu1 %v3844_v24  ;;  %v3939_v23 = vld [vmem:[%s4321_s6 + $0x110] ss:$8 sps:$4 sm:$0xff]  }
  0x8b   : > { %1228 = vmatprep.mubr.bf16.mxu0 %v3845_v25  ;;  %1484 = vmatprep.mubr.bf16.mxu1 %v3847_v26  ;;  %v3940_v24 = vld [vmem:[%s4321_s6 + $0x310] ss:$8 sps:$4 sm:$0xff]   ;;  %v3941_v25 = vld [vmem:[%s4321_s6 + $0x124] ss:$8 sps:$4 sm:$0xff]  }
  0x8c   : > { %v3943_v26 = vld [vmem:[%s4321_s6 + $0x324] ss:$8 sps:$4 sm:$0xff]  }
  0x92   : > { %1229 = vmatmul.mubr.bf16.gmra.mxu0 %v3849_v27  ;;  %1485 = vmatmul.mubr.bf16.gmra.mxu1 %v3850_v28  ;;  %v3945_v27 = vld [vmem:[%s4321_s6 + $0x120] ss:$8 sps:$4 sm:$0xff]  }
  0x93   : > { %1236 = vmatprep.mubr.bf16.mxu0 %v3851_v29  ;;  %1492 = vmatprep.mubr.bf16.mxu1 %v3853_v30  ;;  %v3946_v28 = vld [vmem:[%s4321_s6 + $0x320] ss:$8 sps:$4 sm:$0xff]   ;;  %v3947_v29 = vld [vmem:[%s4321_s6 + $0x134] ss:$8 sps:$4 sm:$0xff]  }
  0x94   : > { %v3949_v30 = vld [vmem:[%s4321_s6 + $0x334] ss:$8 sps:$4 sm:$0xff]  }
  0x9a   : > { %1237 = vmatmul.mubr.bf16.gmra.mxu0 %v3855_v31  ;;  %1493 = vmatmul.mubr.bf16.gmra.mxu1 %v3856_v32  ;;  %v3951_v31 = vld [vmem:[%s4321_s6 + $0x130] ss:$8 sps:$4 sm:$0xff]  }
  0x9b   : > { %1244 = vmatprep.mubr.bf16.mxu0 %v3857_v33  ;;  %1500 = vmatprep.mubr.bf16.mxu1 %v3859_v34  ;;  %v3952_v32 = vld [vmem:[%s4321_s6 + $0x330] ss:$8 sps:$4 sm:$0xff]   ;;  %v3953_v33 = vld [vmem:[%s4321_s6 + $0x144] ss:$8 sps:$4 sm:$0xff]  }
  0x9c   : > { %v3955_v34 = vld [vmem:[%s4321_s6 + $0x344] ss:$8 sps:$4 sm:$0xff]  }
  0xa2   : > { %1245 = vmatmul.mubr.bf16.gmra.mxu0 %v3861_v35  ;;  %1501 = vmatmul.mubr.bf16.gmra.mxu1 %v3862_v36  ;;  %v3957_v35 = vld [vmem:[%s4321_s6 + $0x140] ss:$8 sps:$4 sm:$0xff]  }
  0xa3   : > { %1252 = vmatprep.mubr.bf16.mxu0 %v3863_v37  ;;  %1508 = vmatprep.mubr.bf16.mxu1 %v3865_v38  ;;  %v3958_v36 = vld [vmem:[%s4321_s6 + $0x340] ss:$8 sps:$4 sm:$0xff]   ;;  %v3959_v37 = vld [vmem:[%s4321_s6 + $0x154] ss:$8 sps:$4 sm:$0xff]  }
  0xa4   : > { %v3961_v38 = vld [vmem:[%s4321_s6 + $0x354] ss:$8 sps:$4 sm:$0xff]  }
  0xaa   : > { %1253 = vmatmul.mubr.bf16.gmra.mxu0 %v3867_v39  ;;  %1509 = vmatmul.mubr.bf16.gmra.mxu1 %v3868_v40  ;;  %v3963_v39 = vld [vmem:[%s4321_s6 + $0x150] ss:$8 sps:$4 sm:$0xff]  }
  0xab   : > { %1260 = vmatprep.mubr.bf16.mxu0 %v3869_v41  ;;  %1516 = vmatprep.mubr.bf16.mxu1 %v3871_v42  ;;  %v3964_v40 = vld [vmem:[%s4321_s6 + $0x350] ss:$8 sps:$4 sm:$0xff]   ;;  %v3965_v41 = vld [vmem:[%s4321_s6 + $0x164] ss:$8 sps:$4 sm:$0xff]  }
  0xac   : > { %v3967_v42 = vld [vmem:[%s4321_s6 + $0x364] ss:$8 sps:$4 sm:$0xff]  }
  0xb2   : > { %1261 = vmatmul.mubr.bf16.gmra.mxu0 %v3873_v43  ;;  %1517 = vmatmul.mubr.bf16.gmra.mxu1 %v3874_v44  ;;  %v3969_v43 = vld [vmem:[%s4321_s6 + $0x160] ss:$8 sps:$4 sm:$0xff]  }
  0xb3   : > { %1268 = vmatprep.mubr.bf16.mxu0 %v3875_v45  ;;  %1524 = vmatprep.mubr.bf16.mxu1 %v3877_v46  ;;  %v3970_v44 = vld [vmem:[%s4321_s6 + $0x360] ss:$8 sps:$4 sm:$0xff]   ;;  %v3971_v45 = vld [vmem:[%s4321_s6 + $0x174] ss:$8 sps:$4 sm:$0xff]  }
  0xb4   : > { %v3973_v46 = vld [vmem:[%s4321_s6 + $0x374] ss:$8 sps:$4 sm:$0xff]  }
  0xba   : > { %1269 = vmatmul.mubr.bf16.gmra.mxu0 %v3879_v47  ;;  %1525 = vmatmul.mubr.bf16.gmra.mxu1 %v3880_v48  ;;  %v3975_v47 = vld [vmem:[%s4321_s6 + $0x170] ss:$8 sps:$4 sm:$0xff]  }
  0xbb   : > { %1276 = vmatprep.mubr.bf16.mxu0 %v3881_v49  ;;  %1532 = vmatprep.mubr.bf16.mxu1 %v3883_v50  ;;  %v3976_v48 = vld [vmem:[%s4321_s6 + $0x370] ss:$8 sps:$4 sm:$0xff]   ;;  %v3977_v49 = vld [vmem:[%s4321_s6 + $0x184] ss:$8 sps:$4 sm:$0xff]  }
  0xbc   : > { %v3979_v50 = vld [vmem:[%s4321_s6 + $0x384] ss:$8 sps:$4 sm:$0xff]  }
  0xc2   : > { %1277 = vmatmul.mubr.bf16.gmra.mxu0 %v3885_v51  ;;  %1533 = vmatmul.mubr.bf16.gmra.mxu1 %v3886_v52  ;;  %v3981_v51 = vld [vmem:[%s4321_s6 + $0x180] ss:$8 sps:$4 sm:$0xff]  }
  0xc3   : > { %1284 = vmatprep.mubr.bf16.mxu0 %v3887_v53  ;;  %1540 = vmatprep.mubr.bf16.mxu1 %v3889_v54  ;;  %v3982_v52 = vld [vmem:[%s4321_s6 + $0x380] ss:$8 sps:$4 sm:$0xff]   ;;  %v3983_v53 = vld [vmem:[%s4321_s6 + $0x194] ss:$8 sps:$4 sm:$0xff]  }
  0xc4   : > { %v3985_v54 = vld [vmem:[%s4321_s6 + $0x394] ss:$8 sps:$4 sm:$0xff]  }
  0xca   : > { %1285 = vmatmul.mubr.bf16.gmra.mxu0 %v3891_v55  ;;  %1541 = vmatmul.mubr.bf16.gmra.mxu1 %v3892_v56  ;;  %v4468_v55 = vld [vmem:[%s4891_s2] ss:$0 sm:$0xff] }
  0xcb   : > { %1292 = vmatprep.mubr.bf16.mxu0 %v3893_v57  ;;  %1548 = vmatprep.mubr.bf16.mxu1 %v3895_v58 }
  0xd2   : > { %1293 = vmatmul.mubr.bf16.gmra.mxu0 %v3897_v59  ;;  %1549 = vmatmul.mubr.bf16.gmra.mxu1 %v3898_v60  ;;  %v4474_v59 = vld [vmem:[%s4892_s3] ss:$0 sm:$0xff] }
  0xd3   : > { %1300 = vmatprep.mubr.bf16.mxu0 %v3899_v61  ;;  %1556 = vmatprep.mubr.bf16.mxu1 %v3901_v62 }
  0xda   : > { %1301 = vmatmul.mubr.bf16.gmra.mxu0 %v3903_v63  ;;  %1557 = vmatmul.mubr.bf16.gmra.mxu1 %v3904_v0 }
  0xdb   : > { %1308 = vmatprep.mubr.bf16.mxu0 %v3905_v1  ;;  %1564 = vmatprep.mubr.bf16.mxu1 %v3907_v2 }
  0xe2   : > { %1309 = vmatmul.mubr.bf16.gmra.mxu0 %v3909_v3  ;;  %1565 = vmatmul.mubr.bf16.gmra.mxu1 %v3910_v4  ;;  %v3987_v3 = vld [vmem:[%s4321_s6 + $0x190] ss:$8 sps:$4 sm:$0xff]  }
  0xe3   : > { %1316 = vmatprep.mubr.bf16.mxu0 %v3911_v5  ;;  %1572 = vmatprep.mubr.bf16.mxu1 %v3913_v6  ;;  %v3988_v4 = vld [vmem:[%s4321_s6 + $0x390] ss:$8 sps:$4 sm:$0xff]  }
  0xea   : > { %1317 = vmatmul.mubr.bf16.gmra.mxu0 %v3915_v7  ;;  %1573 = vmatmul.mubr.bf16.gmra.mxu1 %v3916_v8  ;;  %v3989_v7 = vld [vmem:[%s4321_s6 + $0x1a4] ss:$8 sps:$4 sm:$0xff]  }
  0xeb   : > { %1324 = vmatprep.mubr.bf16.mxu0 %v3917_v9  ;;  %1580 = vmatprep.mubr.bf16.mxu1 %v3919_v10  ;;  %v3991_v8 = vld [vmem:[%s4321_s6 + $0x3a4] ss:$8 sps:$4 sm:$0xff]  }
  0xf2   : > { %1325 = vmatmul.mubr.bf16.gmra.mxu0 %v3921_v11  ;;  %1581 = vmatmul.mubr.bf16.gmra.mxu1 %v3922_v12 }
  0xf3   : > { %1332 = vmatprep.mubr.bf16.mxu0 %v3923_v13  ;;  %1588 = vmatprep.mubr.bf16.mxu1 %v3925_v14 }
  0xfa   : > { %1333 = vmatmul.mubr.bf16.gmra.mxu0 %v3927_v15  ;;  %1589 = vmatmul.mubr.bf16.gmra.mxu1 %v3928_v16 }
  0xfb   : > { %1340 = vmatprep.mubr.bf16.mxu0 %v3929_v17  ;;  %1596 = vmatprep.mubr.bf16.mxu1 %v3931_v18 }
 0x102   : > { %1341 = vmatmul.mubr.bf16.gmra.mxu0 %v3933_v19  ;;  %1597 = vmatmul.mubr.bf16.gmra.mxu1 %v3934_v20 }
 0x103   : > { %1348 = vmatprep.mubr.bf16.mxu0 %v3935_v21  ;;  %1604 = vmatprep.mubr.bf16.mxu1 %v3937_v22 }
 0x10a   : > { %1349 = vmatmul.mubr.bf16.gmra.mxu0 %v3939_v23  ;;  %1605 = vmatmul.mubr.bf16.gmra.mxu1 %v3940_v24 }
 0x10b   : > { %1356 = vmatprep.mubr.bf16.mxu0 %v3941_v25  ;;  %1612 = vmatprep.mubr.bf16.mxu1 %v3943_v26 }
 0x112   : > { %1357 = vmatmul.mubr.bf16.gmra.mxu0 %v3945_v27  ;;  %1613 = vmatmul.mubr.bf16.gmra.mxu1 %v3946_v28 }
 0x113   : > { %1364 = vmatprep.mubr.bf16.mxu0 %v3947_v29  ;;  %1620 = vmatprep.mubr.bf16.mxu1 %v3949_v30  ;;  %v3993_v29 = vld [vmem:[%s4321_s6 + $0x1a0] ss:$8 sps:$4 sm:$0xff]  }
 0x114   : > { %v3994_v30 = vld [vmem:[%s4321_s6 + $0x3a0] ss:$8 sps:$4 sm:$0xff]  }
 0x11a   : > { %1365 = vmatmul.mubr.bf16.gmra.mxu0 %v3951_v31  ;;  %1621 = vmatmul.mubr.bf16.gmra.mxu1 %v3952_v32 }
 0x11b   : > { %1372 = vmatprep.mubr.bf16.mxu0 %v3953_v33  ;;  %1628 = vmatprep.mubr.bf16.mxu1 %v3955_v34  ;;  %v3995_v33 = vld [vmem:[%s4321_s6 + $0x1b4] ss:$8 sps:$4 sm:$0xff]  }
 0x11c   : > { %v3997_v34 = vld [vmem:[%s4321_s6 + $0x3b4] ss:$8 sps:$4 sm:$0xff]  }
 0x122   : > { %1373 = vmatmul.mubr.bf16.gmra.mxu0 %v3957_v35  ;;  %1629 = vmatmul.mubr.bf16.gmra.mxu1 %v3958_v36 }
 0x123   : > { %1380 = vmatprep.mubr.bf16.mxu0 %v3959_v37  ;;  %1636 = vmatprep.mubr.bf16.mxu1 %v3961_v38 }
 0x12a   : > { %1381 = vmatmul.mubr.bf16.gmra.mxu0 %v3963_v39  ;;  %1637 = vmatmul.mubr.bf16.gmra.mxu1 %v3964_v40 }
 0x12b   : > { %1388 = vmatprep.mubr.bf16.mxu0 %v3965_v41  ;;  %1644 = vmatprep.mubr.bf16.mxu1 %v3967_v42 }
 0x132   : > { %1389 = vmatmul.mubr.bf16.gmra.mxu0 %v3969_v43  ;;  %1645 = vmatmul.mubr.bf16.gmra.mxu1 %v3970_v44 }
 0x133   : > { %1396 = vmatprep.mubr.bf16.mxu0 %v3971_v45  ;;  %1652 = vmatprep.mubr.bf16.mxu1 %v3973_v46 }
 0x13a   : > { %1397 = vmatmul.mubr.bf16.gmra.mxu0 %v3975_v47  ;;  %1653 = vmatmul.mubr.bf16.gmra.mxu1 %v3976_v48 }
 0x13b   : > { %1404 = vmatprep.mubr.bf16.mxu0 %v3977_v49  ;;  %1660 = vmatprep.mubr.bf16.mxu1 %v3979_v50 }
 0x142   : > { %v1214_v56 = vpop.f32.mrf.mxu0  ;;  %1405 = vmatmul.mubr.bf16.gmra.mxu0 %v3981_v51  ;;  %v1470_v57 = vpop.f32.mrf.mxu1  ;;  %1661 = vmatmul.mubr.bf16.gmra.mxu1 %v3982_v52 }
 0x143   : > { %v1732_v58 = vmul.f32 %v4468_v55, %v1214_v56  ;;  %v1796_v60 = vmul.f32 %v4468_v55, %v1470_v57  ;;  %1412 = vmatprep.mubr.bf16.mxu0 %v3983_v53  ;;  %1668 = vmatprep.mubr.bf16.mxu1 %v3985_v54  ;;  %v3999_v56 = vld [vmem:[%s4321_s6 + $0x1b0] ss:$8 sps:$4 sm:$0xff]  }
 0x144   : > { %v1216_v61 = vpop.f32.mrf.mxu0  ;;  %v1472_v62 = vpop.f32.mrf.mxu1  ;;  %v4000_v57 = vld [vmem:[%s4321_s6 + $0x3b0] ss:$8 sps:$4 sm:$0xff]  }
 0x145   : > { %v1867_v63 = vadd.f32 %v4474_v59, %v1732_v58  ;;  %v1931_v0 = vadd.f32 %v4474_v59, %v1796_v60  ;;  %v4003_v61 = vld [vmem:[%s4321_s6 + $0x1c4] ss:$8 sps:$4 sm:$0xff]  }
 0x146   : > { %v1217_v1 = vpop.f32.mrf.mxu0  ;;  %v1473_v2 = vpop.f32.mrf.mxu1  ;;  %v4006_v62 = vld [vmem:[%s4321_s6 + $0x3c4] ss:$8 sps:$4 sm:$0xff]  }
 0x147   : > { %v1733_v5 = vmul.f32 %v4468_v55, %v1217_v1  ;;  %v1797_v6 = vmul.f32 %v4468_v55, %v1473_v2  ;;  %v1995_v13 = vmax.f32 %v1867_v63, 0.0  ;;  %v2059_v14 = vmax.f32 %v1931_v0, 0.0 }
 0x148   : > { %v1219_v9 = vpop.f32.mrf.mxu0  ;;  %v1475_v10 = vpop.f32.mrf.mxu1 }
 0x149   : > { %v1868_v11 = vadd.f32 %v4474_v59, %v1733_v5  ;;  %v1932_v12 = vadd.f32 %v4474_v59, %v1797_v6 }
 0x14a   : > { %v1222_v15 = vpop.f32.mrf.mxu0  ;;  %1413 = vmatmul.mubr.bf16.gmra.mxu0 %v3987_v3  ;;  %v1478_v16 = vpop.f32.mrf.mxu1  ;;  %1669 = vmatmul.mubr.bf16.gmra.mxu1 %v3988_v4 }
 0x14b   : > { %v1996_v17 = vmax.f32 %v1868_v11, 0.0  ;;  %v2060_v18 = vmax.f32 %v1932_v12, 0.0  ;;  %v1734_v19 = vmul.f32 %v4468_v55, %v1222_v15  ;;  %v1798_v20 = vmul.f32 %v4468_v55, %v1478_v16  ;;  %1420 = vmatprep.mubr.bf16.mxu0 %v3989_v7  ;;  %1676 = vmatprep.mubr.bf16.mxu1 %v3991_v8 }
 0x14c   : > { %v1224_v21 = vpop.f32.mrf.mxu0  ;;  %v1480_v22 = vpop.f32.mrf.mxu1 }
 0x14d   : > { %v3325_v23 = vpack.c.bf16 %v1996_v17, %v1995_v13  ;;  %v3485_v24 = vpack.c.bf16 %v2060_v18, %v2059_v14  ;;  %v1869_v25 = vadd.f32 %v4474_v59, %v1734_v19  ;;  %v1933_v26 = vadd.f32 %v4474_v59, %v1798_v20  ;;  %v4001_v19 = vld [vmem:[%s4321_s6 + $0x1c0] ss:$8 sps:$4 sm:$0xff]  }
 0x14e   : > { %v1225_v27 = vpop.f32.mrf.mxu0  ;;  %v1481_v28 = vpop.f32.mrf.mxu1  ;;  %v4004_v20 = vld [vmem:[%s4321_s6 + $0x3c0] ss:$8 sps:$4 sm:$0xff]  }
 0x14f   : > { %3326 = vst [vmem:[%s4494_s9] sm:$0xff] %v3325_v23   ;;  %3673 = vst [vmem:[%s4494_s9 + $0x100] sm:$0xff] %v3485_v24   ;;  %v1735_v31 = vmul.f32 %v4468_v55, %v1225_v27  ;;  %v1799_v32 = vmul.f32 %v4468_v55, %v1481_v28  ;;  %v1997_v39 = vmax.f32 %v1869_v25, 0.0  ;;  %v2061_v40 = vmax.f32 %v1933_v26, 0.0  ;;  %v4009_v23 = vld [vmem:[%s4321_s6 + $0x1d4] ss:$8 sps:$4 sm:$0xff]  }
 0x150   : > { %v1227_v35 = vpop.f32.mrf.mxu0  ;;  %v1483_v36 = vpop.f32.mrf.mxu1  ;;  %v4012_v24 = vld [vmem:[%s4321_s6 + $0x3d4] ss:$8 sps:$4 sm:$0xff]  }
 0x151   : > { %v1870_v37 = vadd.f32 %v4474_v59, %v1735_v31  ;;  %v1934_v38 = vadd.f32 %v4474_v59, %v1799_v32 }
 0x152   : > { %v1230_v41 = vpop.f32.mrf.mxu0  ;;  %1421 = vmatmul.mubr.bf16.gmra.mxu0 %v3993_v29  ;;  %v1486_v42 = vpop.f32.mrf.mxu1  ;;  %1677 = vmatmul.mubr.bf16.gmra.mxu1 %v3994_v30 }
 0x153   : > { %v1998_v43 = vmax.f32 %v1870_v37, 0.0  ;;  %v2062_v44 = vmax.f32 %v1934_v38, 0.0  ;;  %v1736_v45 = vmul.f32 %v4468_v55, %v1230_v41  ;;  %v1800_v46 = vmul.f32 %v4468_v55, %v1486_v42  ;;  %1428 = vmatprep.mubr.bf16.mxu0 %v3995_v33  ;;  %1684 = vmatprep.mubr.bf16.mxu1 %v3997_v34 }
 0x154   : > { %v1232_v47 = vpop.f32.mrf.mxu0  ;;  %v1488_v48 = vpop.f32.mrf.mxu1 }
 0x155   : > { %v3330_v49 = vpack.c.bf16 %v1998_v43, %v1997_v39  ;;  %v3490_v50 = vpack.c.bf16 %v2062_v44, %v2061_v40  ;;  %v1871_v51 = vadd.f32 %v4474_v59, %v1736_v45  ;;  %v1935_v52 = vadd.f32 %v4474_v59, %v1800_v46  ;;  %v4007_v45 = vld [vmem:[%s4321_s6 + $0x1d0] ss:$8 sps:$4 sm:$0xff]  }
 0x156   : > { %v1233_v53 = vpop.f32.mrf.mxu0  ;;  %v1489_v54 = vpop.f32.mrf.mxu1  ;;  %v4010_v46 = vld [vmem:[%s4321_s6 + $0x3d0] ss:$8 sps:$4 sm:$0xff]  }
 0x157   : > { %3642 = vst [vmem:[%s4494_s9 + $0x8] sm:$0xff] %v3330_v49   ;;  %3674 = vst [vmem:[%s4494_s9 + $0x108] sm:$0xff] %v3490_v50   ;;  %v1737_v58 = vmul.f32 %v4468_v55, %v1233_v53  ;;  %v1801_v60 = vmul.f32 %v4468_v55, %v1489_v54  ;;  %v1999_v3 = vmax.f32 %v1871_v51, 0.0  ;;  %v2063_v4 = vmax.f32 %v1935_v52, 0.0  ;;  %v4015_v49 = vld [vmem:[%s4321_s6 + $0x1e4] ss:$8 sps:$4 sm:$0xff]  }
 0x158   : > { %v1235_v63 = vpop.f32.mrf.mxu0  ;;  %v1491_v0 = vpop.f32.mrf.mxu1  ;;  %v4018_v50 = vld [vmem:[%s4321_s6 + $0x3e4] ss:$8 sps:$4 sm:$0xff]  }
 0x159   : > { %v1872_v1 = vadd.f32 %v4474_v59, %v1737_v58  ;;  %v1936_v2 = vadd.f32 %v4474_v59, %v1801_v60 }
 0x15a   : > { %v1238_v5 = vpop.f32.mrf.mxu0  ;;  %1429 = vmatmul.mubr.bf16.gmra.mxu0 %v3999_v56  ;;  %v1494_v6 = vpop.f32.mrf.mxu1  ;;  %1685 = vmatmul.mubr.bf16.gmra.mxu1 %v4000_v57 }
 0x15b   : > { %v2000_v7 = vmax.f32 %v1872_v1, 0.0  ;;  %v2064_v8 = vmax.f32 %v1936_v2, 0.0  ;;  %v1738_v9 = vmul.f32 %v4468_v55, %v1238_v5  ;;  %v1802_v10 = vmul.f32 %v4468_v55, %v1494_v6  ;;  %1436 = vmatprep.mubr.bf16.mxu0 %v4003_v61  ;;  %1692 = vmatprep.mubr.bf16.mxu1 %v4006_v62 }
 0x15c   : > { %v1240_v11 = vpop.f32.mrf.mxu0  ;;  %v1496_v12 = vpop.f32.mrf.mxu1 }
 0x15d   : > { %v3335_v13 = vpack.c.bf16 %v2000_v7, %v1999_v3  ;;  %v3495_v14 = vpack.c.bf16 %v2064_v8, %v2063_v4  ;;  %v1873_v15 = vadd.f32 %v4474_v59, %v1738_v9  ;;  %v1937_v16 = vadd.f32 %v4474_v59, %v1802_v10  ;;  %v4013_v9 = vld [vmem:[%s4321_s6 + $0x1e0] ss:$8 sps:$4 sm:$0xff]  }
 0x15e   : > { %v1241_v17 = vpop.f32.mrf.mxu0  ;;  %v1497_v18 = vpop.f32.mrf.mxu1  ;;  %v4016_v10 = vld [vmem:[%s4321_s6 + $0x3e0] ss:$8 sps:$4 sm:$0xff]  }
 0x15f   : > { %3643 = vst [vmem:[%s4494_s9 + $0x10] sm:$0xff] %v3335_v13   ;;  %3675 = vst [vmem:[%s4494_s9 + $0x110] sm:$0xff] %v3495_v14   ;;  %v1739_v21 = vmul.f32 %v4468_v55, %v1241_v17  ;;  %v1803_v22 = vmul.f32 %v4468_v55, %v1497_v18  ;;  %v2001_v29 = vmax.f32 %v1873_v15, 0.0  ;;  %v2065_v30 = vmax.f32 %v1937_v16, 0.0  ;;  %v4021_v13 = vld [vmem:[%s4321_s6 + $0x1f4] ss:$8 sps:$4 sm:$0xff]  }
 0x160   : > { %v1243_v25 = vpop.f32.mrf.mxu0  ;;  %v1499_v26 = vpop.f32.mrf.mxu1  ;;  %v4024_v14 = vld [vmem:[%s4321_s6 + $0x3f4] ss:$8 sps:$4 sm:$0xff]  }
 0x161   : > { %v1874_v27 = vadd.f32 %v4474_v59, %v1739_v21  ;;  %v1938_v28 = vadd.f32 %v4474_v59, %v1803_v22 }
 0x162   : > { %v1246_v31 = vpop.f32.mrf.mxu0  ;;  %1437 = vmatmul.mubr.bf16.gmra.mxu0 %v4001_v19  ;;  %v1502_v32 = vpop.f32.mrf.mxu1  ;;  %1693 = vmatmul.mubr.bf16.gmra.mxu1 %v4004_v20 }
 0x163   : > { %v2002_v33 = vmax.f32 %v1874_v27, 0.0  ;;  %v2066_v34 = vmax.f32 %v1938_v28, 0.0  ;;  %v1740_v35 = vmul.f32 %v4468_v55, %v1246_v31  ;;  %v1804_v36 = vmul.f32 %v4468_v55, %v1502_v32  ;;  %1444 = vmatprep.mubr.bf16.mxu0 %v4009_v23  ;;  %1700 = vmatprep.mubr.bf16.mxu1 %v4012_v24 }
 0x164   : > { %v1248_v37 = vpop.f32.mrf.mxu0  ;;  %v1504_v38 = vpop.f32.mrf.mxu1 }
 0x165   : > { %v3340_v39 = vpack.c.bf16 %v2002_v33, %v2001_v29  ;;  %v3500_v40 = vpack.c.bf16 %v2066_v34, %v2065_v30  ;;  %v1875_v41 = vadd.f32 %v4474_v59, %v1740_v35  ;;  %v1939_v42 = vadd.f32 %v4474_v59, %v1804_v36  ;;  %v4019_v35 = vld [vmem:[%s4321_s6 + $0x1f0] ss:$8 sps:$4 sm:$0xff]  }
 0x166   : > { %v1249_v43 = vpop.f32.mrf.mxu0  ;;  %v1505_v44 = vpop.f32.mrf.mxu1  ;;  %v4022_v36 = vld [vmem:[%s4321_s6 + $0x3f0] ss:$8 sps:$4 sm:$0xff]   ;;  %s4081_s6 = scalar_lea.vmem %s4839_s12, 8192 }
 0x167   : > { %3644 = vst [vmem:[%s4494_s9 + $0x18] sm:$0xff] %v3340_v39   ;;  %3676 = vst [vmem:[%s4494_s9 + $0x118] sm:$0xff] %v3500_v40   ;;  %v1741_v47 = vmul.f32 %v4468_v55, %v1249_v43  ;;  %v1805_v48 = vmul.f32 %v4468_v55, %v1505_v44  ;;  %v2003_v56 = vmax.f32 %v1875_v41, 0.0  ;;  %v2067_v57 = vmax.f32 %v1939_v42, 0.0  ;;  %p4082_p1 = scmp.ne.s32.totalorder %s4839_s12, %s4081_s6  ;;  %p4089_p2 = scmp.lt.s32.totalorder %s4087_s27, %s4081_s6 }
 0x168   : > { %v1251_v51 = vpop.f32.mrf.mxu0  ;;  %v1507_v52 = vpop.f32.mrf.mxu1 }
 0x169   : > { %v1876_v53 = vadd.f32 %v4474_v59, %v1741_v47  ;;  %v1940_v54 = vadd.f32 %v4474_v59, %v1805_v48  ;;  %p4083_p8 = pnand %p4082_p1, %p4289_p13  ;;  %p4090_p3 = por %p4089_p2, %p4088_p0 }
 0x16a   : > { %v1254_v58 = vpop.f32.mrf.mxu0  ;;  %1445 = vmatmul.mubr.bf16.gmra.mxu0 %v4007_v45  ;;  %v1510_v60 = vpop.f32.mrf.mxu1  ;;  %1701 = vmatmul.mubr.bf16.gmra.mxu1 %v4010_v46 }
 0x16b   : > { %v2004_v61 = vmax.f32 %v1876_v53, 0.0  ;;  %v2068_v62 = vmax.f32 %v1940_v54, 0.0  ;;  %v1742_v63 = vmul.f32 %v4468_v55, %v1254_v58  ;;  %v1806_v0 = vmul.f32 %v4468_v55, %v1510_v60  ;;  %1452 = vmatprep.mubr.bf16.mxu0 %v4015_v49  ;;  %1708 = vmatprep.mubr.bf16.mxu1 %v4018_v50  ;;  %p4084_p10 = pneg %p4083_p8 }
 0x16c   : > { %v1256_v1 = vpop.f32.mrf.mxu0  ;;  %v1512_v2 = vpop.f32.mrf.mxu1 }
 0x16d   : > { %v3345_v3 = vpack.c.bf16 %v2004_v61, %v2003_v56  ;;  %v3505_v4 = vpack.c.bf16 %v2068_v62, %v2067_v57  ;;  %v1877_v5 = vadd.f32 %v4474_v59, %v1742_v63  ;;  %v1941_v6 = vadd.f32 %v4474_v59, %v1806_v0  ;;  %p4091_p5 = pnand %p4090_p3, %p4084_p10 }
 0x16e   : > { %v1257_v7 = vpop.f32.mrf.mxu0  ;;  %v1513_v8 = vpop.f32.mrf.mxu1 }
 0x16f   : > { %3645 = vst [vmem:[%s4494_s9 + $0x20] sm:$0xff] %v3345_v3   ;;  %3677 = vst [vmem:[%s4494_s9 + $0x120] sm:$0xff] %v3505_v4   ;;  %v1743_v11 = vmul.f32 %v4468_v55, %v1257_v7  ;;  %v1807_v12 = vmul.f32 %v4468_v55, %v1513_v8  ;;  %v2005_v19 = vmax.f32 %v1877_v5, 0.0  ;;  %v2069_v20 = vmax.f32 %v1941_v6, 0.0 }
 0x170   : > { %v1259_v15 = vpop.f32.mrf.mxu0  ;;  %v1515_v16 = vpop.f32.mrf.mxu1 }
 0x171   : > { %v1878_v17 = vadd.f32 %v4474_v59, %v1743_v11  ;;  %v1942_v18 = vadd.f32 %v4474_v59, %v1807_v12 }
 0x172   : > { %v1262_v21 = vpop.f32.mrf.mxu0  ;;  %1453 = vmatmul.mubr.bf16.gmra.mxu0 %v4013_v9  ;;  %v1518_v22 = vpop.f32.mrf.mxu1  ;;  %1709 = vmatmul.mubr.bf16.gmra.mxu1 %v4016_v10 }
 0x173   : > { %v2006_v23 = vmax.f32 %v1878_v17, 0.0  ;;  %v2070_v24 = vmax.f32 %v1942_v18, 0.0  ;;  %v1744_v25 = vmul.f32 %v4468_v55, %v1262_v21  ;;  %v1808_v26 = vmul.f32 %v4468_v55, %v1518_v22  ;;  %1460 = vmatprep.mubr.bf16.mxu0 %v4021_v13  ;;  %1716 = vmatprep.mubr.bf16.mxu1 %v4024_v14 }
 0x174   : > { %v1264_v27 = vpop.f32.mrf.mxu0  ;;  %v1520_v28 = vpop.f32.mrf.mxu1 }
 0x175   : > { %v3350_v29 = vpack.c.bf16 %v2006_v23, %v2005_v19  ;;  %v3510_v30 = vpack.c.bf16 %v2070_v24, %v2069_v20  ;;  %v1879_v31 = vadd.f32 %v4474_v59, %v1744_v25  ;;  %v1943_v32 = vadd.f32 %v4474_v59, %v1808_v26 }
 0x176   : > { %v1265_v33 = vpop.f32.mrf.mxu0  ;;  %v1521_v34 = vpop.f32.mrf.mxu1 }
 0x177   : > { %3646 = vst [vmem:[%s4494_s9 + $0x28] sm:$0xff] %v3350_v29   ;;  %3678 = vst [vmem:[%s4494_s9 + $0x128] sm:$0xff] %v3510_v30   ;;  %v1745_v37 = vmul.f32 %v4468_v55, %v1265_v33  ;;  %v1809_v38 = vmul.f32 %v4468_v55, %v1521_v34  ;;  %v2007_v43 = vmax.f32 %v1879_v31, 0.0  ;;  %v2071_v44 = vmax.f32 %v1943_v32, 0.0 }
 0x178   : > { %v1267_v39 = vpop.f32.mrf.mxu0  ;;  %v1523_v40 = vpop.f32.mrf.mxu1 }
 0x179   : > { %v1880_v41 = vadd.f32 %v4474_v59, %v1745_v37  ;;  %v1944_v42 = vadd.f32 %v4474_v59, %v1809_v38 }
 0x17a   : > { %v1270_v45 = vpop.f32.mrf.mxu0  ;;  %1461 = vmatmul.mubr.bf16.gmra.mxu0 %v4019_v35  ;;  %v1526_v46 = vpop.f32.mrf.mxu1  ;;  %1717 = vmatmul.mubr.bf16.gmra.mxu1 %v4022_v36 }
 0x17b   : > { %v2008_v47 = vmax.f32 %v1880_v41, 0.0  ;;  %v2072_v48 = vmax.f32 %v1944_v42, 0.0  ;;  %v1746_v49 = vmul.f32 %v4468_v55, %v1270_v45  ;;  %v1810_v50 = vmul.f32 %v4468_v55, %v1526_v46 }
 0x17c   : > { %v1272_v51 = vpop.f32.mrf.mxu0  ;;  %v1528_v52 = vpop.f32.mrf.mxu1 }
 0x17d   : > { %v3355_v53 = vpack.c.bf16 %v2008_v47, %v2007_v43  ;;  %v3515_v54 = vpack.c.bf16 %v2072_v48, %v2071_v44  ;;  %v1881_v56 = vadd.f32 %v4474_v59, %v1746_v49  ;;  %v1945_v57 = vadd.f32 %v4474_v59, %v1810_v50 }
 0x17e   : > { %v1273_v58 = vpop.f32.mrf.mxu0  ;;  %v1529_v60 = vpop.f32.mrf.mxu1 }
 0x17f   : > { %3647 = vst [vmem:[%s4494_s9 + $0x30] sm:$0xff] %v3355_v53   ;;  %3679 = vst [vmem:[%s4494_s9 + $0x130] sm:$0xff] %v3515_v54   ;;  %v1747_v61 = vmul.f32 %v4468_v55, %v1273_v58  ;;  %v1811_v62 = vmul.f32 %v4468_v55, %v1529_v60  ;;  %v2009_v3 = vmax.f32 %v1881_v56, 0.0  ;;  %v2073_v4 = vmax.f32 %v1945_v57, 0.0 }
 0x180   : > { %v1275_v63 = vpop.f32.mrf.mxu0  ;;  %v1531_v0 = vpop.f32.mrf.mxu1 }
 0x181   : > { %v1882_v1 = vadd.f32 %v4474_v59, %v1747_v61  ;;  %v1946_v2 = vadd.f32 %v4474_v59, %v1811_v62 }
 0x182   : > { %v1278_v5 = vpop.f32.mrf.mxu0  ;;  %v1534_v6 = vpop.f32.mrf.mxu1 }
 0x183   : > { %v2010_v7 = vmax.f32 %v1882_v1, 0.0  ;;  %v2074_v8 = vmax.f32 %v1946_v2, 0.0  ;;  %v1748_v9 = vmul.f32 %v4468_v55, %v1278_v5  ;;  %v1812_v10 = vmul.f32 %v4468_v55, %v1534_v6 }
 0x184   : > { %v1280_v11 = vpop.f32.mrf.mxu0  ;;  %v1536_v12 = vpop.f32.mrf.mxu1 }
 0x185   : > { %v3360_v13 = vpack.c.bf16 %v2010_v7, %v2009_v3  ;;  %v3520_v14 = vpack.c.bf16 %v2074_v8, %v2073_v4  ;;  %v1883_v15 = vadd.f32 %v4474_v59, %v1748_v9  ;;  %v1947_v16 = vadd.f32 %v4474_v59, %v1812_v10 }
 0x186   : > { %v1281_v17 = vpop.f32.mrf.mxu0  ;;  %v1537_v18 = vpop.f32.mrf.mxu1 }
 0x187   : > { %3648 = vst [vmem:[%s4494_s9 + $0x38] sm:$0xff] %v3360_v13   ;;  %3680 = vst [vmem:[%s4494_s9 + $0x138] sm:$0xff] %v3520_v14   ;;  %v1749_v19 = vmul.f32 %v4468_v55, %v1281_v17  ;;  %v1813_v20 = vmul.f32 %v4468_v55, %v1537_v18  ;;  %v2011_v25 = vmax.f32 %v1883_v15, 0.0  ;;  %v2075_v26 = vmax.f32 %v1947_v16, 0.0 }
 0x188   : > { %v1283_v21 = vpop.f32.mrf.mxu0  ;;  %v1539_v22 = vpop.f32.mrf.mxu1 }
 0x189   : > { %v1884_v23 = vadd.f32 %v4474_v59, %v1749_v19  ;;  %v1948_v24 = vadd.f32 %v4474_v59, %v1813_v20 }
 0x18a   : > { %v1286_v27 = vpop.f32.mrf.mxu0  ;;  %v1542_v28 = vpop.f32.mrf.mxu1 }
 0x18b   : > { %v2012_v29 = vmax.f32 %v1884_v23, 0.0  ;;  %v2076_v30 = vmax.f32 %v1948_v24, 0.0  ;;  %v1750_v31 = vmul.f32 %v4468_v55, %v1286_v27  ;;  %v1814_v32 = vmul.f32 %v4468_v55, %v1542_v28 }
 0x18c   : > { %v1288_v33 = vpop.f32.mrf.mxu0  ;;  %v1544_v34 = vpop.f32.mrf.mxu1 }
 0x18d   : > { %v3365_v35 = vpack.c.bf16 %v2012_v29, %v2011_v25  ;;  %v3525_v36 = vpack.c.bf16 %v2076_v30, %v2075_v26  ;;  %v1885_v37 = vadd.f32 %v4474_v59, %v1750_v31  ;;  %v1949_v38 = vadd.f32 %v4474_v59, %v1814_v32 }
 0x18e   : > { %v1289_v39 = vpop.f32.mrf.mxu0  ;;  %v1545_v40 = vpop.f32.mrf.mxu1 }
 0x18f   : > { %3649 = vst [vmem:[%s4494_s9 + $0x40] sm:$0xff] %v3365_v35   ;;  %3681 = vst [vmem:[%s4494_s9 + $0x140] sm:$0xff] %v3525_v36   ;;  %v1751_v41 = vmul.f32 %v4468_v55, %v1289_v39  ;;  %v1815_v42 = vmul.f32 %v4468_v55, %v1545_v40  ;;  %v2013_v47 = vmax.f32 %v1885_v37, 0.0  ;;  %v2077_v48 = vmax.f32 %v1949_v38, 0.0 }
 0x190   : > { %v1291_v43 = vpop.f32.mrf.mxu0  ;;  %v1547_v44 = vpop.f32.mrf.mxu1 }
 0x191   : > { %v1886_v45 = vadd.f32 %v4474_v59, %v1751_v41  ;;  %v1950_v46 = vadd.f32 %v4474_v59, %v1815_v42 }
 0x192   : > { %v1294_v49 = vpop.f32.mrf.mxu0  ;;  %v1550_v50 = vpop.f32.mrf.mxu1 }
 0x193   : > { %v2014_v51 = vmax.f32 %v1886_v45, 0.0  ;;  %v2078_v52 = vmax.f32 %v1950_v46, 0.0  ;;  %v1752_v53 = vmul.f32 %v4468_v55, %v1294_v49  ;;  %v1816_v54 = vmul.f32 %v4468_v55, %v1550_v50 }
 0x194   : > { %v1296_v56 = vpop.f32.mrf.mxu0  ;;  %v1552_v57 = vpop.f32.mrf.mxu1 }
 0x195   : > { %v3370_v58 = vpack.c.bf16 %v2014_v51, %v2013_v47  ;;  %v3530_v60 = vpack.c.bf16 %v2078_v52, %v2077_v48  ;;  %v1887_v61 = vadd.f32 %v4474_v59, %v1752_v53  ;;  %v1951_v62 = vadd.f32 %v4474_v59, %v1816_v54 }
 0x196   : > { %v1297_v63 = vpop.f32.mrf.mxu0  ;;  %v1553_v0 = vpop.f32.mrf.mxu1 }
 0x197   : > { %3650 = vst [vmem:[%s4494_s9 + $0x48] sm:$0xff] %v3370_v58   ;;  %3682 = vst [vmem:[%s4494_s9 + $0x148] sm:$0xff] %v3530_v60   ;;  %v1753_v1 = vmul.f32 %v4468_v55, %v1297_v63  ;;  %v1817_v2 = vmul.f32 %v4468_v55, %v1553_v0  ;;  %v2015_v7 = vmax.f32 %v1887_v61, 0.0  ;;  %v2079_v8 = vmax.f32 %v1951_v62, 0.0 }
 0x198   : > { %v1299_v3 = vpop.f32.mrf.mxu0  ;;  %v1555_v4 = vpop.f32.mrf.mxu1 }
 0x199   : > { %v1888_v5 = vadd.f32 %v4474_v59, %v1753_v1  ;;  %v1952_v6 = vadd.f32 %v4474_v59, %v1817_v2 }
 0x19a   : > { %v1302_v9 = vpop.f32.mrf.mxu0  ;;  %v1558_v10 = vpop.f32.mrf.mxu1 }
 0x19b   : > { %v2016_v11 = vmax.f32 %v1888_v5, 0.0  ;;  %v2080_v12 = vmax.f32 %v1952_v6, 0.0  ;;  %v1754_v13 = vmul.f32 %v4468_v55, %v1302_v9  ;;  %v1818_v14 = vmul.f32 %v4468_v55, %v1558_v10 }
 0x19c   : > { %v1304_v15 = vpop.f32.mrf.mxu0  ;;  %v1560_v16 = vpop.f32.mrf.mxu1 }
 0x19d   : > { %v3375_v17 = vpack.c.bf16 %v2016_v11, %v2015_v7  ;;  %v3535_v18 = vpack.c.bf16 %v2080_v12, %v2079_v8  ;;  %v1889_v19 = vadd.f32 %v4474_v59, %v1754_v13  ;;  %v1953_v20 = vadd.f32 %v4474_v59, %v1818_v14 }
 0x19e   : > { %v1305_v21 = vpop.f32.mrf.mxu0  ;;  %v1561_v22 = vpop.f32.mrf.mxu1 }
 0x19f   : > { %3651 = vst [vmem:[%s4494_s9 + $0x50] sm:$0xff] %v3375_v17   ;;  %3683 = vst [vmem:[%s4494_s9 + $0x150] sm:$0xff] %v3535_v18   ;;  %v1755_v23 = vmul.f32 %v4468_v55, %v1305_v21  ;;  %v1819_v24 = vmul.f32 %v4468_v55, %v1561_v22  ;;  %v2017_v29 = vmax.f32 %v1889_v19, 0.0  ;;  %v2081_v30 = vmax.f32 %v1953_v20, 0.0 }
 0x1a0   : > { %v1307_v25 = vpop.f32.mrf.mxu0  ;;  %v1563_v26 = vpop.f32.mrf.mxu1 }
 0x1a1   : > { %v1890_v27 = vadd.f32 %v4474_v59, %v1755_v23  ;;  %v1954_v28 = vadd.f32 %v4474_v59, %v1819_v24 }
 0x1a2   : > { %v1310_v31 = vpop.f32.mrf.mxu0  ;;  %v1566_v32 = vpop.f32.mrf.mxu1 }
 0x1a3   : > { %v2018_v33 = vmax.f32 %v1890_v27, 0.0  ;;  %v2082_v34 = vmax.f32 %v1954_v28, 0.0  ;;  %v1756_v35 = vmul.f32 %v4468_v55, %v1310_v31  ;;  %v1820_v36 = vmul.f32 %v4468_v55, %v1566_v32 }
 0x1a4   : > { %v1312_v37 = vpop.f32.mrf.mxu0  ;;  %v1568_v38 = vpop.f32.mrf.mxu1 }
 0x1a5   : > { %v3380_v39 = vpack.c.bf16 %v2018_v33, %v2017_v29  ;;  %v3540_v40 = vpack.c.bf16 %v2082_v34, %v2081_v30  ;;  %v1891_v41 = vadd.f32 %v4474_v59, %v1756_v35  ;;  %v1955_v42 = vadd.f32 %v4474_v59, %v1820_v36 }
 0x1a6   : > { %v1313_v43 = vpop.f32.mrf.mxu0  ;;  %v1569_v44 = vpop.f32.mrf.mxu1 }
 0x1a7   : > { %3652 = vst [vmem:[%s4494_s9 + $0x58] sm:$0xff] %v3380_v39   ;;  %3684 = vst [vmem:[%s4494_s9 + $0x158] sm:$0xff] %v3540_v40   ;;  %v1757_v45 = vmul.f32 %v4468_v55, %v1313_v43  ;;  %v1821_v46 = vmul.f32 %v4468_v55, %v1569_v44  ;;  %v2019_v51 = vmax.f32 %v1891_v41, 0.0  ;;  %v2083_v52 = vmax.f32 %v1955_v42, 0.0 }
 0x1a8   : > { %v1315_v47 = vpop.f32.mrf.mxu0  ;;  %v1571_v48 = vpop.f32.mrf.mxu1 }
 0x1a9   : > { %v1892_v49 = vadd.f32 %v4474_v59, %v1757_v45  ;;  %v1956_v50 = vadd.f32 %v4474_v59, %v1821_v46 }
 0x1aa   : > { %v1318_v53 = vpop.f32.mrf.mxu0  ;;  %v1574_v54 = vpop.f32.mrf.mxu1 }
 0x1ab   : > { %v2020_v56 = vmax.f32 %v1892_v49, 0.0  ;;  %v2084_v57 = vmax.f32 %v1956_v50, 0.0  ;;  %v1758_v58 = vmul.f32 %v4468_v55, %v1318_v53  ;;  %v1822_v60 = vmul.f32 %v4468_v55, %v1574_v54 }
 0x1ac   : > { %v1320_v61 = vpop.f32.mrf.mxu0  ;;  %v1576_v62 = vpop.f32.mrf.mxu1 }
 0x1ad   : > { %v3385_v63 = vpack.c.bf16 %v2020_v56, %v2019_v51  ;;  %v3545_v0 = vpack.c.bf16 %v2084_v57, %v2083_v52  ;;  %v1893_v1 = vadd.f32 %v4474_v59, %v1758_v58  ;;  %v1957_v2 = vadd.f32 %v4474_v59, %v1822_v60 }
 0x1ae   : > { %v1321_v3 = vpop.f32.mrf.mxu0  ;;  %v1577_v4 = vpop.f32.mrf.mxu1 }
 0x1af   : > { %3653 = vst [vmem:[%s4494_s9 + $0x60] sm:$0xff] %v3385_v63   ;;  %3685 = vst [vmem:[%s4494_s9 + $0x160] sm:$0xff] %v3545_v0   ;;  %v1759_v5 = vmul.f32 %v4468_v55, %v1321_v3  ;;  %v1823_v6 = vmul.f32 %v4468_v55, %v1577_v4  ;;  %v2021_v11 = vmax.f32 %v1893_v1, 0.0  ;;  %v2085_v12 = vmax.f32 %v1957_v2, 0.0 }
 0x1b0   : > { %v1323_v7 = vpop.f32.mrf.mxu0  ;;  %v1579_v8 = vpop.f32.mrf.mxu1 }
 0x1b1   : > { %v1894_v9 = vadd.f32 %v4474_v59, %v1759_v5  ;;  %v1958_v10 = vadd.f32 %v4474_v59, %v1823_v6 }
 0x1b2   : > { %v1326_v13 = vpop.f32.mrf.mxu0  ;;  %v1582_v14 = vpop.f32.mrf.mxu1 }
 0x1b3   : > { %v2022_v15 = vmax.f32 %v1894_v9, 0.0  ;;  %v2086_v16 = vmax.f32 %v1958_v10, 0.0  ;;  %v1760_v17 = vmul.f32 %v4468_v55, %v1326_v13  ;;  %v1824_v18 = vmul.f32 %v4468_v55, %v1582_v14 }
 0x1b4   : > { %v1328_v19 = vpop.f32.mrf.mxu0  ;;  %v1584_v20 = vpop.f32.mrf.mxu1 }
 0x1b5   : > { %v3390_v21 = vpack.c.bf16 %v2022_v15, %v2021_v11  ;;  %v3550_v22 = vpack.c.bf16 %v2086_v16, %v2085_v12  ;;  %v1895_v23 = vadd.f32 %v4474_v59, %v1760_v17  ;;  %v1959_v24 = vadd.f32 %v4474_v59, %v1824_v18 }
 0x1b6   : > { %v1329_v25 = vpop.f32.mrf.mxu0  ;;  %v1585_v26 = vpop.f32.mrf.mxu1 }
 0x1b7   : > { %3654 = vst [vmem:[%s4494_s9 + $0x68] sm:$0xff] %v3390_v21   ;;  %3686 = vst [vmem:[%s4494_s9 + $0x168] sm:$0xff] %v3550_v22   ;;  %v1761_v27 = vmul.f32 %v4468_v55, %v1329_v25  ;;  %v1825_v28 = vmul.f32 %v4468_v55, %v1585_v26  ;;  %v2023_v33 = vmax.f32 %v1895_v23, 0.0  ;;  %v2087_v34 = vmax.f32 %v1959_v24, 0.0 }
 0x1b8   : > { %v1331_v29 = vpop.f32.mrf.mxu0  ;;  %v1587_v30 = vpop.f32.mrf.mxu1 }
 0x1b9   : > { %v1896_v31 = vadd.f32 %v4474_v59, %v1761_v27  ;;  %v1960_v32 = vadd.f32 %v4474_v59, %v1825_v28 }
 0x1ba   : > { %v1334_v35 = vpop.f32.mrf.mxu0  ;;  %v1590_v36 = vpop.f32.mrf.mxu1 }
 0x1bb   : > { %v2024_v37 = vmax.f32 %v1896_v31, 0.0  ;;  %v2088_v38 = vmax.f32 %v1960_v32, 0.0  ;;  %v1762_v39 = vmul.f32 %v4468_v55, %v1334_v35  ;;  %v1826_v40 = vmul.f32 %v4468_v55, %v1590_v36 }
 0x1bc   : > { %v1336_v41 = vpop.f32.mrf.mxu0  ;;  %v1592_v42 = vpop.f32.mrf.mxu1 }
 0x1bd   : > { %v3395_v43 = vpack.c.bf16 %v2024_v37, %v2023_v33  ;;  %v3555_v44 = vpack.c.bf16 %v2088_v38, %v2087_v34  ;;  %v1897_v45 = vadd.f32 %v4474_v59, %v1762_v39  ;;  %v1961_v46 = vadd.f32 %v4474_v59, %v1826_v40 }
 0x1be   : > { %v1337_v47 = vpop.f32.mrf.mxu0  ;;  %v1593_v48 = vpop.f32.mrf.mxu1 }
 0x1bf   : > { %3655 = vst [vmem:[%s4494_s9 + $0x70] sm:$0xff] %v3395_v43   ;;  %3687 = vst [vmem:[%s4494_s9 + $0x170] sm:$0xff] %v3555_v44   ;;  %v1763_v49 = vmul.f32 %v4468_v55, %v1337_v47  ;;  %v1827_v50 = vmul.f32 %v4468_v55, %v1593_v48  ;;  %v2025_v56 = vmax.f32 %v1897_v45, 0.0  ;;  %v2089_v57 = vmax.f32 %v1961_v46, 0.0 }
 0x1c0   : > { %v1339_v51 = vpop.f32.mrf.mxu0  ;;  %v1595_v52 = vpop.f32.mrf.mxu1 }
 0x1c1   : > { %v1898_v53 = vadd.f32 %v4474_v59, %v1763_v49  ;;  %v1962_v54 = vadd.f32 %v4474_v59, %v1827_v50 }
 0x1c2   : > { %v1342_v58 = vpop.f32.mrf.mxu0  ;;  %v1598_v60 = vpop.f32.mrf.mxu1 }
 0x1c3   : > { %v2026_v61 = vmax.f32 %v1898_v53, 0.0  ;;  %v2090_v62 = vmax.f32 %v1962_v54, 0.0  ;;  %v1764_v63 = vmul.f32 %v4468_v55, %v1342_v58  ;;  %v1828_v0 = vmul.f32 %v4468_v55, %v1598_v60 }
 0x1c4   : > { %v1344_v1 = vpop.f32.mrf.mxu0  ;;  %v1600_v2 = vpop.f32.mrf.mxu1 }
 0x1c5   : > { %v3400_v3 = vpack.c.bf16 %v2026_v61, %v2025_v56  ;;  %v3560_v4 = vpack.c.bf16 %v2090_v62, %v2089_v57  ;;  %v1899_v5 = vadd.f32 %v4474_v59, %v1764_v63  ;;  %v1963_v6 = vadd.f32 %v4474_v59, %v1828_v0 }
 0x1c6   : > { %v1345_v7 = vpop.f32.mrf.mxu0  ;;  %v1601_v8 = vpop.f32.mrf.mxu1 }
 0x1c7   : > { %3656 = vst [vmem:[%s4494_s9 + $0x78] sm:$0xff] %v3400_v3   ;;  %3688 = vst [vmem:[%s4494_s9 + $0x178] sm:$0xff] %v3560_v4   ;;  %v1765_v9 = vmul.f32 %v4468_v55, %v1345_v7  ;;  %v1829_v10 = vmul.f32 %v4468_v55, %v1601_v8  ;;  %v2027_v15 = vmax.f32 %v1899_v5, 0.0  ;;  %v2091_v16 = vmax.f32 %v1963_v6, 0.0  ;;  %v4695_v3 = vld [vmem:[%s4891_s2] ss:$0 sm:$0xff] }
 0x1c8   : > { %v1347_v11 = vpop.f32.mrf.mxu0  ;;  %v1603_v12 = vpop.f32.mrf.mxu1  ;;  %v4702_v8 = vld [vmem:[%s4892_s3] ss:$0 sm:$0xff] }
 0x1c9   : > { %v1900_v13 = vadd.f32 %v4474_v59, %v1765_v9  ;;  %v1964_v14 = vadd.f32 %v4474_v59, %v1829_v10 }
 0x1ca   : > { %v1350_v17 = vpop.f32.mrf.mxu0  ;;  %v1606_v18 = vpop.f32.mrf.mxu1 }
 0x1cb   : > { %v2028_v19 = vmax.f32 %v1900_v13, 0.0  ;;  %v2092_v20 = vmax.f32 %v1964_v14, 0.0  ;;  %v1766_v21 = vmul.f32 %v4468_v55, %v1350_v17  ;;  %v1830_v22 = vmul.f32 %v4468_v55, %v1606_v18 }
 0x1cc   : > { %v1352_v23 = vpop.f32.mrf.mxu0  ;;  %v1608_v24 = vpop.f32.mrf.mxu1 }
 0x1cd   : > { %v3405_v25 = vpack.c.bf16 %v2028_v19, %v2027_v15  ;;  %v3565_v26 = vpack.c.bf16 %v2092_v20, %v2091_v16  ;;  %v1901_v27 = vadd.f32 %v4474_v59, %v1766_v21  ;;  %v1965_v28 = vadd.f32 %v4474_v59, %v1830_v22 }
 0x1ce   : > { %v1353_v29 = vpop.f32.mrf.mxu0  ;;  %v1609_v30 = vpop.f32.mrf.mxu1 }
 0x1cf   : > { %3657 = vst [vmem:[%s4494_s9 + $0x80] sm:$0xff] %v3405_v25   ;;  %3689 = vst [vmem:[%s4494_s9 + $0x180] sm:$0xff] %v3565_v26   ;;  %v1767_v31 = vmul.f32 %v4468_v55, %v1353_v29  ;;  %v1831_v32 = vmul.f32 %v4468_v55, %v1609_v30  ;;  %v2029_v37 = vmax.f32 %v1901_v27, 0.0  ;;  %v2093_v38 = vmax.f32 %v1965_v28, 0.0 }
 0x1d0   : > { %v1355_v33 = vpop.f32.mrf.mxu0  ;;  %v1611_v34 = vpop.f32.mrf.mxu1 }
 0x1d1   : > { %v1902_v35 = vadd.f32 %v4474_v59, %v1767_v31  ;;  %v1966_v36 = vadd.f32 %v4474_v59, %v1831_v32 }
 0x1d2   : > { %v1358_v39 = vpop.f32.mrf.mxu0  ;;  %v1614_v40 = vpop.f32.mrf.mxu1 }
 0x1d3   : > { %v2030_v41 = vmax.f32 %v1902_v35, 0.0  ;;  %v2094_v42 = vmax.f32 %v1966_v36, 0.0  ;;  %v1768_v43 = vmul.f32 %v4468_v55, %v1358_v39  ;;  %v1832_v44 = vmul.f32 %v4468_v55, %v1614_v40 }
 0x1d4   : > { %v1360_v45 = vpop.f32.mrf.mxu0  ;;  %v1616_v46 = vpop.f32.mrf.mxu1 }
 0x1d5   : > { %v3410_v47 = vpack.c.bf16 %v2030_v41, %v2029_v37  ;;  %v3570_v48 = vpack.c.bf16 %v2094_v42, %v2093_v38  ;;  %v1903_v49 = vadd.f32 %v4474_v59, %v1768_v43  ;;  %v1967_v50 = vadd.f32 %v4474_v59, %v1832_v44 }
 0x1d6   : > { %v1361_v51 = vpop.f32.mrf.mxu0  ;;  %v1617_v52 = vpop.f32.mrf.mxu1 }
 0x1d7   : > { %3658 = vst [vmem:[%s4494_s9 + $0x88] sm:$0xff] %v3410_v47   ;;  %3690 = vst [vmem:[%s4494_s9 + $0x188] sm:$0xff] %v3570_v48   ;;  %v1769_v53 = vmul.f32 %v4468_v55, %v1361_v51  ;;  %v1833_v54 = vmul.f32 %v4468_v55, %v1617_v52  ;;  %v2031_v61 = vmax.f32 %v1903_v49, 0.0  ;;  %v2095_v62 = vmax.f32 %v1967_v50, 0.0 }
 0x1d8   : > { %v1363_v56 = vpop.f32.mrf.mxu0  ;;  %v1619_v57 = vpop.f32.mrf.mxu1 }
 0x1d9   : > { %v1904_v58 = vadd.f32 %v4474_v59, %v1769_v53  ;;  %v1968_v60 = vadd.f32 %v4474_v59, %v1833_v54 }
 0x1da   : > { %v1366_v63 = vpop.f32.mrf.mxu0  ;;  %v1622_v0 = vpop.f32.mrf.mxu1 }
 0x1db   : > { %v2032_v1 = vmax.f32 %v1904_v58, 0.0  ;;  %v2096_v2 = vmax.f32 %v1968_v60, 0.0  ;;  %v1770_v55 = vmul.f32 %v4695_v3, %v1366_v63  ;;  %v1834_v4 = vmul.f32 %v4695_v3, %v1622_v0 }
 0x1dc   : > { %v1368_v5 = vpop.f32.mrf.mxu0  ;;  %v1624_v6 = vpop.f32.mrf.mxu1 }
 0x1dd   : > { %v3415_v59 = vpack.c.bf16 %v2032_v1, %v2031_v61  ;;  %v3575_v7 = vpack.c.bf16 %v2096_v2, %v2095_v62  ;;  %v1905_v9 = vadd.f32 %v4702_v8, %v1770_v55  ;;  %v1969_v10 = vadd.f32 %v4702_v8, %v1834_v4 }
 0x1de   : > { %v1369_v11 = vpop.f32.mrf.mxu0  ;;  %v1625_v12 = vpop.f32.mrf.mxu1 }
 0x1df   : > { %3659 = vst [vmem:[%s4494_s9 + $0x90] sm:$0xff] %v3415_v59   ;;  %3691 = vst [vmem:[%s4494_s9 + $0x190] sm:$0xff] %v3575_v7   ;;  %v1771_v13 = vmul.f32 %v4695_v3, %v1369_v11  ;;  %v1835_v14 = vmul.f32 %v4695_v3, %v1625_v12  ;;  %v2033_v19 = vmax.f32 %v1905_v9, 0.0  ;;  %v2097_v20 = vmax.f32 %v1969_v10, 0.0 }
 0x1e0   : > { %v1371_v15 = vpop.f32.mrf.mxu0  ;;  %v1627_v16 = vpop.f32.mrf.mxu1 }
 0x1e1   : > { %v1906_v17 = vadd.f32 %v4702_v8, %v1771_v13  ;;  %v1970_v18 = vadd.f32 %v4702_v8, %v1835_v14 }
 0x1e2   : > { %v1374_v21 = vpop.f32.mrf.mxu0  ;;  %v1630_v22 = vpop.f32.mrf.mxu1 }
 0x1e3   : > { %v2034_v23 = vmax.f32 %v1906_v17, 0.0  ;;  %v2098_v24 = vmax.f32 %v1970_v18, 0.0  ;;  %v1772_v25 = vmul.f32 %v4695_v3, %v1374_v21  ;;  %v1836_v26 = vmul.f32 %v4695_v3, %v1630_v22 }
 0x1e4   : > { %v1376_v27 = vpop.f32.mrf.mxu0  ;;  %v1632_v28 = vpop.f32.mrf.mxu1 }
 0x1e5   : > { %v3420_v29 = vpack.c.bf16 %v2034_v23, %v2033_v19  ;;  %v3580_v30 = vpack.c.bf16 %v2098_v24, %v2097_v20  ;;  %v1907_v31 = vadd.f32 %v4702_v8, %v1772_v25  ;;  %v1971_v32 = vadd.f32 %v4702_v8, %v1836_v26 }
 0x1e6   : > { %v1377_v33 = vpop.f32.mrf.mxu0  ;;  %v1633_v34 = vpop.f32.mrf.mxu1 }
 0x1e7   : > { %3660 = vst [vmem:[%s4494_s9 + $0x98] sm:$0xff] %v3420_v29   ;;  %3692 = vst [vmem:[%s4494_s9 + $0x198] sm:$0xff] %v3580_v30   ;;  %v1773_v35 = vmul.f32 %v4695_v3, %v1377_v33  ;;  %v1837_v36 = vmul.f32 %v4695_v3, %v1633_v34  ;;  %v2035_v41 = vmax.f32 %v1907_v31, 0.0  ;;  %v2099_v42 = vmax.f32 %v1971_v32, 0.0 }
 0x1e8   : > { %v1379_v37 = vpop.f32.mrf.mxu0  ;;  %v1635_v38 = vpop.f32.mrf.mxu1 }
 0x1e9   : > { %v1908_v39 = vadd.f32 %v4702_v8, %v1773_v35  ;;  %v1972_v40 = vadd.f32 %v4702_v8, %v1837_v36 }
 0x1ea   : > { %v1382_v43 = vpop.f32.mrf.mxu0  ;;  %v1638_v44 = vpop.f32.mrf.mxu1 }
 0x1eb   : > { %v2036_v45 = vmax.f32 %v1908_v39, 0.0  ;;  %v2100_v46 = vmax.f32 %v1972_v40, 0.0  ;;  %v1774_v47 = vmul.f32 %v4695_v3, %v1382_v43  ;;  %v1838_v48 = vmul.f32 %v4695_v3, %v1638_v44 }
 0x1ec   : > { %v1384_v49 = vpop.f32.mrf.mxu0  ;;  %v1640_v50 = vpop.f32.mrf.mxu1 }
 0x1ed   : > { %v3425_v51 = vpack.c.bf16 %v2036_v45, %v2035_v41  ;;  %v3585_v52 = vpack.c.bf16 %v2100_v46, %v2099_v42  ;;  %v1909_v53 = vadd.f32 %v4702_v8, %v1774_v47  ;;  %v1973_v54 = vadd.f32 %v4702_v8, %v1838_v48 }
 0x1ee   : > { %v1385_v56 = vpop.f32.mrf.mxu0  ;;  %v1641_v57 = vpop.f32.mrf.mxu1 }
 0x1ef   : > { %3661 = vst [vmem:[%s4494_s9 + $0xa0] sm:$0xff] %v3425_v51   ;;  %3693 = vst [vmem:[%s4494_s9 + $0x1a0] sm:$0xff] %v3585_v52   ;;  %v1775_v58 = vmul.f32 %v4695_v3, %v1385_v56  ;;  %v1839_v60 = vmul.f32 %v4695_v3, %v1641_v57  ;;  %v2037_v1 = vmax.f32 %v1909_v53, 0.0  ;;  %v2101_v2 = vmax.f32 %v1973_v54, 0.0 }
 0x1f0   : > { %v1387_v61 = vpop.f32.mrf.mxu0  ;;  %v1643_v62 = vpop.f32.mrf.mxu1 }
 0x1f1   : > { %v1910_v63 = vadd.f32 %v4702_v8, %v1775_v58  ;;  %v1974_v0 = vadd.f32 %v4702_v8, %v1839_v60 }
 0x1f2   : > { %v1390_v55 = vpop.f32.mrf.mxu0  ;;  %v1646_v4 = vpop.f32.mrf.mxu1 }
 0x1f3   : > { %v2038_v5 = vmax.f32 %v1910_v63, 0.0  ;;  %v2102_v6 = vmax.f32 %v1974_v0, 0.0  ;;  %v1776_v59 = vmul.f32 %v4695_v3, %v1390_v55  ;;  %v1840_v7 = vmul.f32 %v4695_v3, %v1646_v4 }
 0x1f4   : > { %v1392_v9 = vpop.f32.mrf.mxu0  ;;  %v1648_v10 = vpop.f32.mrf.mxu1 }
 0x1f5   : > { %v3430_v11 = vpack.c.bf16 %v2038_v5, %v2037_v1  ;;  %v3590_v12 = vpack.c.bf16 %v2102_v6, %v2101_v2  ;;  %v1911_v13 = vadd.f32 %v4702_v8, %v1776_v59  ;;  %v1975_v14 = vadd.f32 %v4702_v8, %v1840_v7 }
 0x1f6   : > { %v1393_v15 = vpop.f32.mrf.mxu0  ;;  %v1649_v16 = vpop.f32.mrf.mxu1 }
 0x1f7   : > { %3662 = vst [vmem:[%s4494_s9 + $0xa8] sm:$0xff] %v3430_v11   ;;  %3694 = vst [vmem:[%s4494_s9 + $0x1a8] sm:$0xff] %v3590_v12   ;;  %v1777_v17 = vmul.f32 %v4695_v3, %v1393_v15  ;;  %v1841_v18 = vmul.f32 %v4695_v3, %v1649_v16  ;;  %v2039_v23 = vmax.f32 %v1911_v13, 0.0  ;;  %v2103_v24 = vmax.f32 %v1975_v14, 0.0 }
 0x1f8   : > { %v1395_v19 = vpop.f32.mrf.mxu0  ;;  %v1651_v20 = vpop.f32.mrf.mxu1 }
 0x1f9   : > { %v1912_v21 = vadd.f32 %v4702_v8, %v1777_v17  ;;  %v1976_v22 = vadd.f32 %v4702_v8, %v1841_v18 }
 0x1fa   : > { %v1398_v25 = vpop.f32.mrf.mxu0  ;;  %v1654_v26 = vpop.f32.mrf.mxu1 }
 0x1fb   : > { %v2040_v27 = vmax.f32 %v1912_v21, 0.0  ;;  %v2104_v28 = vmax.f32 %v1976_v22, 0.0  ;;  %v1778_v29 = vmul.f32 %v4695_v3, %v1398_v25  ;;  %v1842_v30 = vmul.f32 %v4695_v3, %v1654_v26 }
 0x1fc   : > { %v1400_v31 = vpop.f32.mrf.mxu0  ;;  %v1656_v32 = vpop.f32.mrf.mxu1 }
 0x1fd   : > { %v3435_v33 = vpack.c.bf16 %v2040_v27, %v2039_v23  ;;  %v3595_v34 = vpack.c.bf16 %v2104_v28, %v2103_v24  ;;  %v1913_v35 = vadd.f32 %v4702_v8, %v1778_v29  ;;  %v1977_v36 = vadd.f32 %v4702_v8, %v1842_v30 }
 0x1fe   : > { %v1401_v37 = vpop.f32.mrf.mxu0  ;;  %v1657_v38 = vpop.f32.mrf.mxu1 }
 0x1ff   : > { %3663 = vst [vmem:[%s4494_s9 + $0xb0] sm:$0xff] %v3435_v33   ;;  %3695 = vst [vmem:[%s4494_s9 + $0x1b0] sm:$0xff] %v3595_v34   ;;  %v1779_v39 = vmul.f32 %v4695_v3, %v1401_v37  ;;  %v1843_v40 = vmul.f32 %v4695_v3, %v1657_v38  ;;  %v2041_v45 = vmax.f32 %v1913_v35, 0.0  ;;  %v2105_v46 = vmax.f32 %v1977_v36, 0.0 }
 0x200   : > { %v1403_v41 = vpop.f32.mrf.mxu0  ;;  %v1659_v42 = vpop.f32.mrf.mxu1 }
 0x201   : > { %v1914_v43 = vadd.f32 %v4702_v8, %v1779_v39  ;;  %v1978_v44 = vadd.f32 %v4702_v8, %v1843_v40 }
 0x202   : > { %v1406_v47 = vpop.f32.mrf.mxu0  ;;  %v1662_v48 = vpop.f32.mrf.mxu1 }
 0x203   : > { %v2042_v49 = vmax.f32 %v1914_v43, 0.0  ;;  %v2106_v50 = vmax.f32 %v1978_v44, 0.0  ;;  %v1780_v51 = vmul.f32 %v4695_v3, %v1406_v47  ;;  %v1844_v52 = vmul.f32 %v4695_v3, %v1662_v48 }
 0x204   : > { %v1408_v53 = vpop.f32.mrf.mxu0  ;;  %v1664_v54 = vpop.f32.mrf.mxu1 }
 0x205   : > { %v3440_v56 = vpack.c.bf16 %v2042_v49, %v2041_v45  ;;  %v3600_v57 = vpack.c.bf16 %v2106_v50, %v2105_v46  ;;  %v1915_v58 = vadd.f32 %v4702_v8, %v1780_v51  ;;  %v1979_v60 = vadd.f32 %v4702_v8, %v1844_v52 }
 0x206   : > { %v1409_v61 = vpop.f32.mrf.mxu0  ;;  %v1665_v62 = vpop.f32.mrf.mxu1 }
 0x207   : > { %3664 = vst [vmem:[%s4494_s9 + $0xb8] sm:$0xff] %v3440_v56   ;;  %3696 = vst [vmem:[%s4494_s9 + $0x1b8] sm:$0xff] %v3600_v57   ;;  %v1781_v63 = vmul.f32 %v4695_v3, %v1409_v61  ;;  %v1845_v0 = vmul.f32 %v4695_v3, %v1665_v62  ;;  %v2043_v5 = vmax.f32 %v1915_v58, 0.0  ;;  %v2107_v6 = vmax.f32 %v1979_v60, 0.0 }
 0x208   : > { %v1411_v1 = vpop.f32.mrf.mxu0  ;;  %v1667_v2 = vpop.f32.mrf.mxu1 }
 0x209   : > { %v1916_v55 = vadd.f32 %v4702_v8, %v1781_v63  ;;  %v1980_v4 = vadd.f32 %v4702_v8, %v1845_v0 }
 0x20a   : > { %v1414_v59 = vpop.f32.mrf.mxu0  ;;  %v1670_v7 = vpop.f32.mrf.mxu1 }
 0x20b   : > { %v2044_v9 = vmax.f32 %v1916_v55, 0.0  ;;  %v2108_v10 = vmax.f32 %v1980_v4, 0.0  ;;  %v1782_v11 = vmul.f32 %v4695_v3, %v1414_v59  ;;  %v1846_v12 = vmul.f32 %v4695_v3, %v1670_v7 }
 0x20c   : > { %v1416_v13 = vpop.f32.mrf.mxu0  ;;  %v1672_v14 = vpop.f32.mrf.mxu1 }
 0x20d   : > { %v3445_v15 = vpack.c.bf16 %v2044_v9, %v2043_v5  ;;  %v3605_v16 = vpack.c.bf16 %v2108_v10, %v2107_v6  ;;  %v1917_v17 = vadd.f32 %v4702_v8, %v1782_v11  ;;  %v1981_v18 = vadd.f32 %v4702_v8, %v1846_v12 }
 0x20e   : > { %v1417_v19 = vpop.f32.mrf.mxu0  ;;  %v1673_v20 = vpop.f32.mrf.mxu1 }
 0x20f   : > { %3665 = vst [vmem:[%s4494_s9 + $0xc0] sm:$0xff] %v3445_v15   ;;  %3697 = vst [vmem:[%s4494_s9 + $0x1c0] sm:$0xff] %v3605_v16   ;;  %v1783_v21 = vmul.f32 %v4695_v3, %v1417_v19  ;;  %v1847_v22 = vmul.f32 %v4695_v3, %v1673_v20  ;;  %v2045_v27 = vmax.f32 %v1917_v17, 0.0  ;;  %v2109_v28 = vmax.f32 %v1981_v18, 0.0 }
 0x210   : > { %v1419_v23 = vpop.f32.mrf.mxu0  ;;  %v1675_v24 = vpop.f32.mrf.mxu1 }
 0x211   : > { %v1918_v25 = vadd.f32 %v4702_v8, %v1783_v21  ;;  %v1982_v26 = vadd.f32 %v4702_v8, %v1847_v22 }
 0x212   : > { %v1422_v29 = vpop.f32.mrf.mxu0  ;;  %v1678_v30 = vpop.f32.mrf.mxu1 }
 0x213   : > { %v2046_v31 = vmax.f32 %v1918_v25, 0.0  ;;  %v2110_v32 = vmax.f32 %v1982_v26, 0.0  ;;  %v1784_v33 = vmul.f32 %v4695_v3, %v1422_v29  ;;  %v1848_v34 = vmul.f32 %v4695_v3, %v1678_v30 }
 0x214   : > { %v1424_v35 = vpop.f32.mrf.mxu0  ;;  %v1680_v36 = vpop.f32.mrf.mxu1 }
 0x215   : > { %v3450_v37 = vpack.c.bf16 %v2046_v31, %v2045_v27  ;;  %v3610_v38 = vpack.c.bf16 %v2110_v32, %v2109_v28  ;;  %v1919_v39 = vadd.f32 %v4702_v8, %v1784_v33  ;;  %v1983_v40 = vadd.f32 %v4702_v8, %v1848_v34 }
 0x216   : > { %v1425_v41 = vpop.f32.mrf.mxu0  ;;  %v1681_v42 = vpop.f32.mrf.mxu1 }
 0x217   : > { %3666 = vst [vmem:[%s4494_s9 + $0xc8] sm:$0xff] %v3450_v37   ;;  %3698 = vst [vmem:[%s4494_s9 + $0x1c8] sm:$0xff] %v3610_v38   ;;  %v1785_v43 = vmul.f32 %v4695_v3, %v1425_v41  ;;  %v1849_v44 = vmul.f32 %v4695_v3, %v1681_v42  ;;  %v2047_v49 = vmax.f32 %v1919_v39, 0.0  ;;  %v2111_v50 = vmax.f32 %v1983_v40, 0.0 }
 0x218   : > { %v1427_v45 = vpop.f32.mrf.mxu0  ;;  %v1683_v46 = vpop.f32.mrf.mxu1 }
 0x219   : > { %v1920_v47 = vadd.f32 %v4702_v8, %v1785_v43  ;;  %v1984_v48 = vadd.f32 %v4702_v8, %v1849_v44 }
 0x21a   : > { %v1430_v51 = vpop.f32.mrf.mxu0  ;;  %v1686_v52 = vpop.f32.mrf.mxu1 }
 0x21b   : > { %v2048_v53 = vmax.f32 %v1920_v47, 0.0  ;;  %v2112_v54 = vmax.f32 %v1984_v48, 0.0  ;;  %v1786_v56 = vmul.f32 %v4695_v3, %v1430_v51  ;;  %v1850_v57 = vmul.f32 %v4695_v3, %v1686_v52 }
 0x21c   : > { %v1432_v58 = vpop.f32.mrf.mxu0  ;;  %v1688_v60 = vpop.f32.mrf.mxu1 }
 0x21d   : > { %v3455_v61 = vpack.c.bf16 %v2048_v53, %v2047_v49  ;;  %v3615_v62 = vpack.c.bf16 %v2112_v54, %v2111_v50  ;;  %v1921_v63 = vadd.f32 %v4702_v8, %v1786_v56  ;;  %v1985_v0 = vadd.f32 %v4702_v8, %v1850_v57 }
 0x21e   : > { %v1433_v1 = vpop.f32.mrf.mxu0  ;;  %v1689_v2 = vpop.f32.mrf.mxu1 }
 0x21f   : > { %3667 = vst [vmem:[%s4494_s9 + $0xd0] sm:$0xff] %v3455_v61   ;;  %3699 = vst [vmem:[%s4494_s9 + $0x1d0] sm:$0xff] %v3615_v62   ;;  %v1787_v55 = vmul.f32 %v4695_v3, %v1433_v1  ;;  %v1851_v4 = vmul.f32 %v4695_v3, %v1689_v2  ;;  %v2049_v9 = vmax.f32 %v1921_v63, 0.0  ;;  %v2113_v10 = vmax.f32 %v1985_v0, 0.0 }
 0x220   : > { %v1435_v5 = vpop.f32.mrf.mxu0  ;;  %v1691_v6 = vpop.f32.mrf.mxu1 }
 0x221   : > { %v1922_v59 = vadd.f32 %v4702_v8, %v1787_v55  ;;  %v1986_v7 = vadd.f32 %v4702_v8, %v1851_v4 }
 0x222   : > { %v1438_v11 = vpop.f32.mrf.mxu0  ;;  %v1694_v12 = vpop.f32.mrf.mxu1 }
 0x223   : > { %v2050_v13 = vmax.f32 %v1922_v59, 0.0  ;;  %v2114_v14 = vmax.f32 %v1986_v7, 0.0  ;;  %v1788_v15 = vmul.f32 %v4695_v3, %v1438_v11  ;;  %v1852_v16 = vmul.f32 %v4695_v3, %v1694_v12 }
 0x224   : > { %v1440_v17 = vpop.f32.mrf.mxu0  ;;  %v1696_v18 = vpop.f32.mrf.mxu1 }
 0x225   : > { %v3460_v19 = vpack.c.bf16 %v2050_v13, %v2049_v9  ;;  %v3620_v20 = vpack.c.bf16 %v2114_v14, %v2113_v10  ;;  %v1923_v21 = vadd.f32 %v4702_v8, %v1788_v15  ;;  %v1987_v22 = vadd.f32 %v4702_v8, %v1852_v16 }
 0x226   : > { %v1441_v23 = vpop.f32.mrf.mxu0  ;;  %v1697_v24 = vpop.f32.mrf.mxu1 }
 0x227   : > { %3668 = vst [vmem:[%s4494_s9 + $0xd8] sm:$0xff] %v3460_v19   ;;  %3700 = vst [vmem:[%s4494_s9 + $0x1d8] sm:$0xff] %v3620_v20   ;;  %v1789_v25 = vmul.f32 %v4695_v3, %v1441_v23  ;;  %v1853_v26 = vmul.f32 %v4695_v3, %v1697_v24  ;;  %v2051_v31 = vmax.f32 %v1923_v21, 0.0  ;;  %v2115_v32 = vmax.f32 %v1987_v22, 0.0 }
 0x228   : > { %v1443_v27 = vpop.f32.mrf.mxu0  ;;  %v1699_v28 = vpop.f32.mrf.mxu1 }
 0x229   : > { %v1924_v29 = vadd.f32 %v4702_v8, %v1789_v25  ;;  %v1988_v30 = vadd.f32 %v4702_v8, %v1853_v26 }
 0x22a   : > { %v1446_v33 = vpop.f32.mrf.mxu0  ;;  %v1702_v34 = vpop.f32.mrf.mxu1 }
 0x22b   : > { %v2052_v35 = vmax.f32 %v1924_v29, 0.0  ;;  %v2116_v36 = vmax.f32 %v1988_v30, 0.0  ;;  %v1790_v37 = vmul.f32 %v4695_v3, %v1446_v33  ;;  %v1854_v38 = vmul.f32 %v4695_v3, %v1702_v34 }
 0x22c   : > { %v1448_v39 = vpop.f32.mrf.mxu0  ;;  %v1704_v40 = vpop.f32.mrf.mxu1 }
 0x22d   : > { %v3465_v41 = vpack.c.bf16 %v2052_v35, %v2051_v31  ;;  %v3625_v42 = vpack.c.bf16 %v2116_v36, %v2115_v32  ;;  %v1925_v43 = vadd.f32 %v4702_v8, %v1790_v37  ;;  %v1989_v44 = vadd.f32 %v4702_v8, %v1854_v38 }
 0x22e   : > { %v1449_v45 = vpop.f32.mrf.mxu0  ;;  %v1705_v46 = vpop.f32.mrf.mxu1 }
 0x22f   : > { %3669 = vst [vmem:[%s4494_s9 + $0xe0] sm:$0xff] %v3465_v41   ;;  %3701 = vst [vmem:[%s4494_s9 + $0x1e0] sm:$0xff] %v3625_v42   ;;  %v1791_v47 = vmul.f32 %v4695_v3, %v1449_v45  ;;  %v1855_v48 = vmul.f32 %v4695_v3, %v1705_v46  ;;  %v2053_v53 = vmax.f32 %v1925_v43, 0.0  ;;  %v2117_v54 = vmax.f32 %v1989_v44, 0.0 }
 0x230   : > { %v1451_v49 = vpop.f32.mrf.mxu0  ;;  %v1707_v50 = vpop.f32.mrf.mxu1 }
 0x231   : > { %v1926_v51 = vadd.f32 %v4702_v8, %v1791_v47  ;;  %v1990_v52 = vadd.f32 %v4702_v8, %v1855_v48 }
 0x232   : > { %v1454_v56 = vpop.f32.mrf.mxu0  ;;  %v1710_v57 = vpop.f32.mrf.mxu1 }
 0x233   : > { %v2054_v58 = vmax.f32 %v1926_v51, 0.0  ;;  %v2118_v60 = vmax.f32 %v1990_v52, 0.0  ;;  %v1792_v61 = vmul.f32 %v4695_v3, %v1454_v56  ;;  %v1856_v62 = vmul.f32 %v4695_v3, %v1710_v57 }
 0x234   : > { %v1456_v63 = vpop.f32.mrf.mxu0  ;;  %v1712_v0 = vpop.f32.mrf.mxu1 }
 0x235   : > { %v3470_v1 = vpack.c.bf16 %v2054_v58, %v2053_v53  ;;  %v3630_v2 = vpack.c.bf16 %v2118_v60, %v2117_v54  ;;  %v1927_v55 = vadd.f32 %v4702_v8, %v1792_v61  ;;  %v1991_v4 = vadd.f32 %v4702_v8, %v1856_v62 }
 0x236   : > { %v1457_v5 = vpop.f32.mrf.mxu0  ;;  %v1713_v6 = vpop.f32.mrf.mxu1 }
 0x237   : > { %3670 = vst [vmem:[%s4494_s9 + $0xe8] sm:$0xff] %v3470_v1   ;;  %3702 = vst [vmem:[%s4494_s9 + $0x1e8] sm:$0xff] %v3630_v2   ;;  %v1793_v59 = vmul.f32 %v4695_v3, %v1457_v5  ;;  %v1857_v7 = vmul.f32 %v4695_v3, %v1713_v6  ;;  %v2055_v13 = vmax.f32 %v1927_v55, 0.0  ;;  %v2119_v14 = vmax.f32 %v1991_v4, 0.0 }
 0x238   : > { %v1459_v9 = vpop.f32.mrf.mxu0  ;;  %v1715_v10 = vpop.f32.mrf.mxu1 }
 0x239   : > { %v1928_v11 = vadd.f32 %v4702_v8, %v1793_v59  ;;  %v1992_v12 = vadd.f32 %v4702_v8, %v1857_v7 }
 0x23a   : > { %v1462_v15 = vpop.f32.mrf.mxu0  ;;  %v1718_v16 = vpop.f32.mrf.mxu1 }
 0x23b   : > { %v2056_v17 = vmax.f32 %v1928_v11, 0.0  ;;  %v2120_v18 = vmax.f32 %v1992_v12, 0.0  ;;  %v1794_v19 = vmul.f32 %v4695_v3, %v1462_v15  ;;  %v1858_v20 = vmul.f32 %v4695_v3, %v1718_v16 }
 0x23c   : > { %v1464_v21 = vpop.f32.mrf.mxu0  ;;  %v1720_v22 = vpop.f32.mrf.mxu1 }
 0x23d   : > { %v3475_v23 = vpack.c.bf16 %v2056_v17, %v2055_v13  ;;  %v3635_v24 = vpack.c.bf16 %v2120_v18, %v2119_v14  ;;  %v1929_v27 = vadd.f32 %v4702_v8, %v1794_v19  ;;  %v1993_v28 = vadd.f32 %v4702_v8, %v1858_v20 }
 0x23e   : > { %v1465_v25 = vpop.f32.mrf.mxu0  ;;  %v1721_v26 = vpop.f32.mrf.mxu1 }
 0x23f   : > { %3671 = vst [vmem:[%s4494_s9 + $0xf0] sm:$0xff] %v3475_v23   ;;  %3703 = vst [vmem:[%s4494_s9 + $0x1f0] sm:$0xff] %v3635_v24   ;;  %v1795_v29 = vmul.f32 %v4695_v3, %v1465_v25  ;;  %v1859_v30 = vmul.f32 %v4695_v3, %v1721_v26  ;;  %v2057_v35 = vmax.f32 %v1929_v27, 0.0  ;;  %v2121_v36 = vmax.f32 %v1993_v28, 0.0 }
 0x240   : > { %v1467_v31 = vpop.f32.mrf.mxu0  ;;  %v1723_v32 = vpop.f32.mrf.mxu1 }
 0x241   : > { %v1930_v33 = vadd.f32 %v4702_v8, %v1795_v29  ;;  %v1994_v34 = vadd.f32 %v4702_v8, %v1859_v30 }
 0x243   : > { %v2058_v37 = vmax.f32 %v1930_v33, 0.0  ;;  %v2122_v38 = vmax.f32 %v1994_v34, 0.0 }
 0x245   : > { %v3480_v3 = vpack.c.bf16 %v2058_v37, %v2057_v35  ;;  %v3640_v39 = vpack.c.bf16 %v2122_v38, %v2121_v36 }
 0x247   : > { %3672 = vst [vmem:[%s4494_s9 + $0xf8] sm:$0xff] %v3480_v3   ;;  %3704 = vst [vmem:[%s4494_s9 + $0x1f8] sm:$0xff] %v3640_v39  }
 0x248   : > { %4094 = shalt.err (!%p4091_p5)
}
 0x249   : > { %s4095_s7 = scalar_lea.hbm %s4837_s1, 8192  ;;  %s4099_s24 = scalar_lea.hbm %s4893_s4, 16384 }
 0x24a   : > { %p4096_p7 = scmp.ne.s32.totalorder %s4837_s1, %s4095_s7  ;;  %p4100_p9 = scmp.lt.s32.totalorder %s4837_s1, %s4893_s4 }
 0x24b   : > { %p4101_p11 = scmp.lt.s32.totalorder %s4099_s24, %s4095_s7 }
 0x24c   : > { %p4097_p6 = pnand %p4096_p7, %p4289_p13 }
 0x24d   : > { %p4102_p12 = por %p4101_p11, %p4100_p9 }
 0x24e   : > { %p4098_p4 = pneg %p4097_p6 }
 0x250   : > { %p4103_p1 = pnand %p4102_p12, %p4098_p4 }
 0x252   : > { %4106 = shalt.err (!%p4103_p1)
}
 0x253   : > { %s4175_s11 = smov 64   ;;  %s4176_s29 = smov 4  }
 0x254   : > { %3743 = dma.vmem_to_hbm [thread:$0]  (%p4289_p13), %s4839_s12, 8192, %s4837_s1, %s2764_s18, %s4175_s11, %s4175_s11, %s4176_s29  }
 0x255 PF: > { %s2793_s22 = sand.u32 1, %s4145_s15   ;;  %p4907_p8 = scmp.ne.s32.totalorder %s4899_s26, 0 }
 0x256   : > { %p4908_p10 = scmp.ge.s32.totalorder %s4165_s20, 2  ;;  %s2794_s30 = scalar_lea.sflag [#allocation4], %s2793_s22 }
 0x258   : > { %p3754_p0 = pnand %p4908_p10, %p4907_p8 }
 0x25a   : > { %p3755_p2 = pneg %p3754_p0 }
 0x25c   : > { %4140 = dma.done.wait (%p3755_p2), %s2794_s30, 8192  }
 0x25d   : > { %4142 = vsyncadd (%p3755_p2), %s2794_s30, 4294959104  ;;  %s21_s20 = sadd.s32 1, %s4165_s20   ;;  %s4909_s15 = smov %s4149_s16 }
 0x25e   : > { %p18_p3 = scmp.ge.s32.totalorder %s21_s20, 4   ;;  %s4910_s16 = smov %s4153_s17 }
 0x25f   : > { %s4911_s17 = smov %s4298_s28  ;;  %s4912_s18 = smov %s4161_s19 }
 0x260   : > { %s4913_s19 = smov %s4915_s5  ;;  %20 = sbr.rel (!%p18_p3) target bundleno = 9 (0x9), region = 92 }
 0x265   :  { %2799 = vsyncpa [#allocation3], 1 }
 0x266   :  { %2801 = vsyncpa [#allocation3 + $0x1], 1 }
 0x267   :  { %2802 = vsyncpa [#allocation6], 1 }
 0x268   :  { %2803 = vsyncpa [#allocation4], 1 }
 0x269   :  { %2805 = vsyncpa [#allocation4 + $0x1], 1 }

</bundles_post_ra>
